<compile_context>
chip_gen: v7x
topology: tpu7x:2x2x1
jax: 0.10.0
libtpu: 0.0.40
codegen_flags: <defaults>
</compile_context>

<pallas_src>
import dataclasses
import functools
from typing import Any, Dict, Optional

import jax
import jax.numpy as jnp
from jax.experimental import pallas as pl
from jax.experimental.pallas import tpu as pltpu

BETA = 0.9      # LIF leak
THETA = 1.0     # LIF firing threshold


@dataclasses.dataclass
class GraphExecutorState:
    """JAX mirror of nirtorch's GraphExecutorState."""
    state: Dict[str, Any] = dataclasses.field(default_factory=dict)
    cache: Dict[str, Any] = dataclasses.field(default_factory=dict)


def _pick_block_b(B: int) -> int:
    """Largest sublane-dense batch tile dividing B; prefer >=2 batch blocks
    (v7x megacore) once tiles are >= 64 rows."""
    cands = [c for c in (256, 128, 64, 32, 16, 8) if B % c == 0]
    if not cands:
        # TODO(synk): pad B to a multiple of 8 instead of degrading to masked stores.
        return B
    best = cands[0]
    if B // best < 2:
        for c in cands:
            if c >= 64 and B // c >= 2:
                return c
    return best


def _pick_tt(T: int) -> int:
    """Timesteps per grid step (amortize per-step overhead); must divide T."""
    for c in (8, 4, 2, 1):
        if T % c == 0:
            return c
    return 1


def _graph_kernel(x_ref, w1_ref, b1_ref, w2_ref, b2_ref,
                  mem1_in_ref, mem2_in_ref, *out_refs, emit_cache: bool):
    """TT timesteps of the fused NIR graph for one batch block.

    Grid = (batch_blocks, T // TT).  Membrane state lives directly in the
    VMEM-resident (constant-index along time) membrane output blocks; HBM
    traffic for state is the aliased-input read at t==0 and one writeback per
    batch block.
    """
    if emit_cache:
        (spk2_ref, mem1_ref, mem2_ref,
         fc1_ref, spk1_ref, fc2_ref) = out_refs
    else:
        spk2_ref, mem1_ref, mem2_ref = out_refs
        fc1_ref = spk1_ref = fc2_ref = None

    tt, block_b, d_in = x_ref.shape

    @pl.when(pl.program_id(1) == 0)
    def _init():
        mem1_ref[...] = mem1_in_ref[...]
        mem2_ref[...] = mem2_in_ref[...]

    # node fc1 (first node: receives `data`) for the whole time block as ONE
    # matmul: (TT*block_b, D) @ (D, H).  f32 reshape is a tile relabel for
    # block_b % 8 == 0; bf16 cast only feeds the MXU, accumulation is f32.
    x_all = x_ref[...].reshape(tt * block_b, d_in).astype(jnp.bfloat16)
    h1_all = jnp.dot(x_all, w1_ref[...],
                     preferred_element_type=jnp.float32) + b1_ref[...]

    w2 = w2_ref[...]          # hoisted: loaded once per time block
    b2 = b2_ref[...]
    mem1 = mem1_ref[...]
    mem2 = mem2_ref[...]

    # Unrolled lif1 -> fc2 -> lif2 recurrence over the TT timesteps.
    for s in range(tt):
        h1 = h1_all[s * block_b:(s + 1) * block_b, :]

        # node lif1 (stateful): inputs = [cache[fc1]] + old_state[lif1]
        mem1 = BETA * mem1 + h1
        spk1 = (mem1 > THETA).astype(jnp.float32)
        mem1 = mem1 - spk1 * THETA

        # node fc2: inputs = [cache[lif1]]
        h2 = jnp.dot(spk1.astype(jnp.bfloat16), w2,
                     preferred_element_type=jnp.float32) + b2

        # node lif2 (stateful): two source nodes -> stack([fc2, fc1]).sum(0)
        mem2 = BETA * mem2 + (h2 + h1)
        spk2 = (mem2 > THETA).astype(jnp.float32)
        mem2 = mem2 - spk2 * THETA

        spk2_ref[s] = spk2.astype(spk2_ref.dtype)   # bf16, lossless {0,1}
        if emit_cache:
            fc1_ref[s] = h1
            spk1_ref[s] = spk1.astype(spk1_ref.dtype)
            fc2_ref[s] = h2

    mem1_ref[...] = mem1
    mem2_ref[...] = mem2


class GraphExecutor:
    """JAX/Pallas re-implementation of nirtorch.GraphExecutor for the fixed
    synthetic graph (fc1 -> lif1 -> fc2 -> lif2, skip edge fc1 -> lif2).
    `__call__` matches the single-step torch forward; `run_sequence` fuses T
    timesteps into a single pallas_call."""

    def __init__(self, d_in: int, hidden: int, return_state: bool = True,
                 return_cache: bool = False, key=None):
        if key is None:
            key = jax.random.PRNGKey(0)
        self.return_state = return_state
        self.return_cache = return_cache
        self.d_in, self.hidden = d_in, hidden
        k1, k2, k3, k4 = jax.random.split(key, 4)
        s1 = 1.0 / jnp.sqrt(d_in)
        s2 = 1.0 / jnp.sqrt(hidden)
        # Linear params stored as [in, out] (torch's W.T); weights bf16 for
        # full-rate MXU on v6e/v7x, biases f32 (added after f32 accumulation).
        self.w1 = jax.random.uniform(k1, (d_in, hidden), jnp.float32,
                                     -s1, s1).astype(jnp.bfloat16)
        self.b1 = jax.random.uniform(k2, (1, hidden), jnp.float32, -s1, s1)
        self.w2 = jax.random.uniform(k3, (hidden, hidden), jnp.float32,
                                     -s2, s2).astype(jnp.bfloat16)
        self.b2 = jax.random.uniform(k4, (1, hidden), jnp.float32, -s2, s2)

    # ------------------------------------------------------------------ #
    def _run(self, data_seq: jnp.ndarray, state: Optional[GraphExecutorState],
             tt: Optional[int] = None):
        T, B, D = data_seq.shape
        assert D == self.d_in, "input feature dim mismatch"
        H = self.hidden
        if state is None:
            state = GraphExecutorState()
        zeros = jnp.zeros((B, H), jnp.float32)
        mem1_old = state.state.get("lif1", (zeros,))[0]
        mem2_old = state.state.get("lif2", (zeros,))[0]

        block_b = _pick_block_b(B)
        if tt is None:
            tt = _pick_tt(T)
        assert T % tt == 0, "T must be divisible by the time block"
        grid = (B // block_b, T // tt)        # (parallel batch, sequential time)

        seq_in_spec = pl.BlockSpec((tt, block_b, D), lambda b, t: (t, b, 0))
        seq_out_spec = pl.BlockSpec((tt, block_b, H), lambda b, t: (t, b, 0))
        mem_spec = pl.BlockSpec((block_b, H), lambda b, t: (b, 0))

        def resident_spec(shape):
            # Constant block index + single buffer: DMA'ed once, VMEM-resident
            # for all T steps, half the resident-weight VMEM of the default.
            return pl.BlockSpec(shape, lambda b, t: (0, 0),
                                pipeline_mode=pl.Buffered(1))

        in_specs = [
            seq_in_spec,
            resident_spec(self.w1.shape), resident_spec(self.b1.shape),
            resident_spec(self.w2.shape), resident_spec(self.b2.shape),
            mem_spec, mem_spec,
        ]
        out_specs = [seq_out_spec, mem_spec, mem_spec]
        out_shapes = [
            jax.ShapeDtypeStruct((T, B, H), jnp.bfloat16),  # lif2 spikes
            jax.ShapeDtypeStruct((B, H), jnp.float32),      # new lif1 membrane
            jax.ShapeDtypeStruct((B, H), jnp.float32),      # new lif2 membrane
        ]
        if self.return_cache:
            out_specs += [seq_out_spec] * 3
            out_shapes += [
                jax.ShapeDtypeStruct((T, B, H), jnp.float32),   # fc1
                jax.ShapeDtypeStruct((T, B, H), jnp.bfloat16),  # lif1 spikes
                jax.ShapeDtypeStruct((T, B, H), jnp.float32),   # fc2
            ]

        # Rough resident-VMEM estimate; only raise the scoped limit when the
        # default would be tight (realistic hidden sizes), capped for v7x.
        est = ((self.w1.size + self.w2.size) * 2
               + (self.b1.size + self.b2.size) * 4
               + tt * block_b * D * 4 * 2          # x double-buffered
               + tt * block_b * H * 2 * 2          # spk out double-buffered
               + block_b * H * 4 * 6)              # mem in/out
        if self.return_cache:
            est += tt * block_b * H * 10 * 2
        cp_kwargs = dict(dimension_semantics=("parallel", "arbitrary"))
        if est > 24 * 1024 * 1024:
            cp_kwargs["vmem_limit_bytes"] = int(
                min(max(est * 3 // 2, 32 * 1024 * 1024), 64 * 1024 * 1024))

        outs = pl.pallas_call(
            functools.partial(_graph_kernel, emit_cache=self.return_cache),
            grid=grid,
            in_specs=in_specs,
            out_specs=tuple(out_specs),
            out_shape=tuple(out_shapes),
            # in-place recurrent state update: mem_old -> mem_new
            input_output_aliases={5: 1, 6: 2},
            compiler_params=pltpu.CompilerParams(**cp_kwargs),
        )(data_seq, self.w1, self.b1, self.w2, self.b2, mem1_old, mem2_old)

        spk_seq, mem1_new, mem2_new = outs[0], outs[1], outs[2]
        cache_seqs = outs[3:] if self.return_cache else ()
        return spk_seq, mem1_new, mem2_new, cache_seqs

    def _pack_state(self, mem1, mem2, cache):
        return GraphExecutorState(state={"lif1": (mem1,), "lif2": (mem2,)},
                                  cache=cache)

    # ------------------------------------------------------------------ #
    def run_sequence(self, data_seq: jnp.ndarray,
                     state: Optional[GraphExecutorState] = None,
                     tt: Optional[int] = None):
        """Run T timesteps fused in one pallas_call. data_seq: [T, B, d_in]."""
        spk_seq, mem1, mem2, cache_seqs = self._run(data_seq, state, tt)
        cache = {"lif2": spk_seq}
        if self.return_cache:
            cache.update({"fc1": cache_seqs[0], "lif1": cache_seqs[1],
                          "fc2": cache_seqs[2]})
        if self.return_state:
            return spk_seq, self._pack_state(mem1, mem2, cache)
        return spk_seq

    def __call__(self, data: jnp.ndarray,
                 state: Optional[GraphExecutorState] = None):
        """Single timestep, matching nirtorch.GraphExecutor.forward."""
        spk_seq, mem1, mem2, cache_seqs = self._run(data[None], state, tt=1)
        out = spk_seq[0]
        cache = {"lif2": out}
        if self.return_cache:
            cache.update({"fc1": cache_seqs[0][0], "lif1": cache_seqs[1][0],
                          "fc2": cache_seqs[2][0]})
        if self.return_state:
            return out, self._pack_state(mem1, mem2, cache)
        return out


def _reference_step(ex: GraphExecutor, x, mem1, mem2):
    """Pure-JAX reference mirroring GraphExecutor._apply_module semantics
    (same bf16-matmul / f32-LIF arithmetic as the kernel)."""
    h1 = jnp.dot(x.astype(jnp.bfloat16), ex.w1,
                 preferred_element_type=jnp.float32) + ex.b1
    m1 = BETA * mem1 + h1
    s1 = (m1 > THETA).astype(jnp.float32)
    m1 = m1 - s1 * THETA
    h2 = jnp.dot(s1.astype(jnp.bfloat16), ex.w2,
                 preferred_element_type=jnp.float32) + ex.b2
    lif2_in = jnp.stack([h2, h1]).sum(0)      # multi-source stack + sum
    m2 = BETA * mem2 + lif2_in
    s2 = (m2 > THETA).astype(jnp.float32)
    m2 = m2 - s2 * THETA
    return s2, m1, m2


if __name__ == "__main__":
    # Lane/sublane-dense small shapes: B multiple of 16 (bf16 sublane tiles),
    # D_IN / H multiples of 128 (lanes).  T=16 with TT=8 -> two time blocks,
    # exercising the cross-block membrane carry.
    T, B, D_IN, H = 16, 16, 128, 128
    key = jax.random.PRNGKey(0)
    kx, kp = jax.random.split(key)
    data_seq = jax.random.normal(kx, (T, B, D_IN), jnp.float32)

    executor = GraphExecutor(D_IN, H, return_state=True, key=kp)

    # ---- pure-JAX reference over the sequence -------------------------- #
    mem1_r = jnp.zeros((B, H), jnp.float32)
    mem2_r = jnp.zeros((B, H), jnp.float32)
    ref_spk, ref_m1, ref_m2 = [], [], []
    for t in range(T):
        s2, mem1_r, mem2_r = _reference_step(executor, data_seq[t],
                                             mem1_r, mem2_r)
        ref_spk.append(s2)
        ref_m1.append(mem1_r)
        ref_m2.append(mem2_r)
    ref_seq = jnp.stack(ref_spk)

    # ---- 1) fused multi-step run: whole sequence in ONE pallas_call ---- #
    out_seq, st_seq = executor.run_sequence(data_seq)
    jax.block_until_ready((out_seq, st_seq.state["lif1"][0],
                           st_seq.state["lif2"][0]))
    assert jnp.allclose(out_seq.astype(jnp.float32), ref_seq, atol=1e-3), \
        "sequence spike mismatch"
    assert jnp.allclose(st_seq.state["lif1"][0], ref_m1[-1], atol=2e-3)
    assert jnp.allclose(st_seq.state["lif2"][0], ref_m2[-1], atol=2e-3)

    # ---- 2) single-step API (torch-forward semantics) with state ------- #
    out1, st1 = executor(data_seq[0])
    jax.block_until_ready(out1)
    assert jnp.allclose(out1.astype(jnp.float32), ref_seq[0], atol=1e-3)
    assert jnp.allclose(st1.state["lif1"][0], ref_m1[0], atol=2e-3)
    assert jnp.allclose(st1.state["lif2"][0], ref_m2[0], atol=2e-3)

    out2, st2 = executor(data_seq[1], st1)
    jax.block_until_ready(out2)
    assert jnp.allclose(out2.astype(jnp.float32), ref_seq[1], atol=1e-3)
    assert jnp.allclose(st2.state["lif1"][0], ref_m1[1], atol=2e-3)
    assert jnp.allclose(st2.state["lif2"][0], ref_m2[1], atol=2e-3)

    print("KERNEL_OK")
</pallas_src>

<mosaic_0001>
module attributes {stable_mosaic.version = 11 : i64} {
  func.func @_graph_kernel(%arg0: i32, %arg1: i32, %arg2: memref<8x16x128xf32, #tpu.memory_space<vmem>>, %arg3: memref<128x128xbf16, #tpu.memory_space<vmem>>, %arg4: memref<1x128xf32, #tpu.memory_space<vmem>>, %arg5: memref<128x128xbf16, #tpu.memory_space<vmem>>, %arg6: memref<1x128xf32, #tpu.memory_space<vmem>>, %arg7: memref<16x128xf32, #tpu.memory_space<vmem>>, %arg8: memref<16x128xf32, #tpu.memory_space<vmem>>, %arg9: memref<8x16x128xbf16, #tpu.memory_space<vmem>>, %arg10: memref<16x128xf32, #tpu.memory_space<vmem>>, %arg11: memref<16x128xf32, #tpu.memory_space<vmem>>) attributes {dimension_semantics = [#tpu.dimension_semantics<parallel>, #tpu.dimension_semantics<arbitrary>], iteration_bounds = array<i64: 1, 2>, scalar_prefetch = 0 : i64, scratch_operands = 0 : i64, tpu.core_type = #tpu.core_type<tc>, window_params = [{transform_indices = @transform_0, window_bounds = array<i64: 8, 16, 128>}, {pipeline_mode = #tpu.pipeline_mode<synchronous>, transform_indices = @transform_1, window_bounds = array<i64: 128, 128>}, {pipeline_mode = #tpu.pipeline_mode<synchronous>, transform_indices = @transform_2, window_bounds = array<i64: 1, 128>}, {pipeline_mode = #tpu.pipeline_mode<synchronous>, transform_indices = @transform_3, window_bounds = array<i64: 128, 128>}, {pipeline_mode = #tpu.pipeline_mode<synchronous>, transform_indices = @transform_4, window_bounds = array<i64: 1, 128>}, {transform_indices = @transform_5, window_bounds = array<i64: 16, 128>}, {transform_indices = @transform_6, window_bounds = array<i64: 16, 128>}, {transform_indices = @transform_7, window_bounds = array<i64: 8, 16, 128>}, {transform_indices = @transform_8, window_bounds = array<i64: 16, 128>}, {transform_indices = @transform_9, window_bounds = array<i64: 16, 128>}]} {
    %c0_i32 = arith.constant 0 : i32
    %0 = arith.cmpi eq, %arg1, %c0_i32 : i32
    %1 = arith.extui %0 : i1 to i32
    %c0_i32_0 = arith.constant 0 : i32
    %2 = arith.cmpi ne, %1, %c0_i32_0 : i32
    scf.if %2 {
      %c0_92 = arith.constant 0 : index
      %c0_93 = arith.constant 0 : index
      %257 = vector.load %arg7[%c0_92, %c0_93] : memref<16x128xf32, #tpu.memory_space<vmem>>, vector<16x128xf32>
      %c0_94 = arith.constant 0 : index
      %c0_95 = arith.constant 0 : index
      %258 = vector.load %arg10[%c0_94, %c0_95] : memref<16x128xf32, #tpu.memory_space<vmem>>, vector<16x128xf32>
      tpu.vector_store %arg10[%c0_94, %c0_95], %257 {strides = array<i32>} : memref<16x128xf32, #tpu.memory_space<vmem>>, vector<16x128xf32>,
      %c0_96 = arith.constant 0 : index
      %c0_97 = arith.constant 0 : index
      %259 = vector.load %arg8[%c0_96, %c0_97] : memref<16x128xf32, #tpu.memory_space<vmem>>, vector<16x128xf32>
      %c0_98 = arith.constant 0 : index
      %c0_99 = arith.constant 0 : index
      %260 = vector.load %arg11[%c0_98, %c0_99] : memref<16x128xf32, #tpu.memory_space<vmem>>, vector<16x128xf32>
      tpu.vector_store %arg11[%c0_98, %c0_99], %259 {strides = array<i32>} : memref<16x128xf32, #tpu.memory_space<vmem>>, vector<16x128xf32>,
    } else {
    }
    %c0 = arith.constant 0 : index
    %c0_1 = arith.constant 0 : index
    %c0_2 = arith.constant 0 : index
    %3 = vector.load %arg2[%c0, %c0_1, %c0_2] : memref<8x16x128xf32, #tpu.memory_space<vmem>>, vector<8x16x128xf32>
    %4 = vector.shape_cast %3 : vector<8x16x128xf32> to vector<128x128xf32>
    %5 = arith.truncf %4 : vector<128x128xf32> to vector<128x128xbf16>
    %c0_3 = arith.constant 0 : index
    %c0_4 = arith.constant 0 : index
    %6 = vector.load %arg3[%c0_3, %c0_4] : memref<128x128xbf16, #tpu.memory_space<vmem>>, vector<128x128xbf16>
    %cst = arith.constant dense<0.000000e+00> : vector<128x128xf32>
    %7 = tpu.matmul %5, %6, %cst {dimension_numbers = #tpu.dot_dimension_numbers<[1], [0], [0], [1], [0, 0, 1, 1], [], []>} : vector<128x128xbf16>, vector<128x128xbf16>, vector<128x128xf32> -> vector<128x128xf32>
    %c0_5 = arith.constant 0 : index
    %c0_6 = arith.constant 0 : index
    %8 = vector.load %arg4[%c0_5, %c0_6] : memref<1x128xf32, #tpu.memory_space<vmem>>, vector<1x128xf32>
    %9 = vector.broadcast %8 : vector<1x128xf32> to vector<128x128xf32>
    %10 = arith.addf %7, %9 : vector<128x128xf32>
    %c0_7 = arith.constant 0 : index
    %c0_8 = arith.constant 0 : index
    %11 = vector.load %arg5[%c0_7, %c0_8] : memref<128x128xbf16, #tpu.memory_space<vmem>>, vector<128x128xbf16>
    %c0_9 = arith.constant 0 : index
    %c0_10 = arith.constant 0 : index
    %12 = vector.load %arg6[%c0_9, %c0_10] : memref<1x128xf32, #tpu.memory_space<vmem>>, vector<1x128xf32>
    %c0_11 = arith.constant 0 : index
    %c0_12 = arith.constant 0 : index
    %13 = vector.load %arg10[%c0_11, %c0_12] : memref<16x128xf32, #tpu.memory_space<vmem>>, vector<16x128xf32>
    %c0_13 = arith.constant 0 : index
    %c0_14 = arith.constant 0 : index
    %14 = vector.load %arg11[%c0_13, %c0_14] : memref<16x128xf32, #tpu.memory_space<vmem>>, vector<16x128xf32>
    %15 = vector.extract_strided_slice %10 {offsets = [0, 0], sizes = [16, 128], strides = [1, 1]} : vector<128x128xf32> to vector<16x128xf32>
    %cst_15 = arith.constant 0.899999976 : f32
    %16 = vector.broadcast %cst_15 : f32 to vector<16x128xf32>
    %17 = arith.mulf %16, %13 : vector<16x128xf32>
    %18 = arith.addf %17, %15 : vector<16x128xf32>
    %cst_16 = arith.constant 1.000000e+00 : f32
    %19 = vector.broadcast %cst_16 : f32 to vector<16x128xf32>
    %20 = arith.cmpf ogt, %18, %19 : vector<16x128xf32>
    %21 = arith.extui %20 : vector<16x128xi1> to vector<16x128xi32>
    %22 = arith.sitofp %21 : vector<16x128xi32> to vector<16x128xf32>
    %cst_17 = arith.constant 1.000000e+00 : f32
    %23 = vector.broadcast %cst_17 : f32 to vector<16x128xf32>
    %24 = arith.mulf %22, %23 : vector<16x128xf32>
    %25 = arith.subf %18, %24 : vector<16x128xf32>
    %26 = arith.truncf %22 : vector<16x128xf32> to vector<16x128xbf16>
    %cst_18 = arith.constant dense<0.000000e+00> : vector<16x128xf32>
    %27 = tpu.matmul %26, %11, %cst_18 {dimension_numbers = #tpu.dot_dimension_numbers<[1], [0], [0], [1], [0, 0, 1, 1], [], []>} : vector<16x128xbf16>, vector<128x128xbf16>, vector<16x128xf32> -> vector<16x128xf32>
    %28 = vector.broadcast %12 : vector<1x128xf32> to vector<16x128xf32>
    %29 = arith.addf %27, %28 : vector<16x128xf32>
    %cst_19 = arith.constant 0.899999976 : f32
    %30 = vector.broadcast %cst_19 : f32 to vector<16x128xf32>
    %31 = arith.mulf %30, %14 : vector<16x128xf32>
    %32 = arith.addf %29, %15 : vector<16x128xf32>
    %33 = arith.addf %31, %32 : vector<16x128xf32>
    %cst_20 = arith.constant 1.000000e+00 : f32
    %34 = vector.broadcast %cst_20 : f32 to vector<16x128xf32>
    %35 = arith.cmpf ogt, %33, %34 : vector<16x128xf32>
    %36 = arith.extui %35 : vector<16x128xi1> to vector<16x128xi32>
    %37 = arith.sitofp %36 : vector<16x128xi32> to vector<16x128xf32>
    %cst_21 = arith.constant 1.000000e+00 : f32
    %38 = vector.broadcast %cst_21 : f32 to vector<16x128xf32>
    %39 = arith.mulf %37, %38 : vector<16x128xf32>
    %40 = arith.subf %33, %39 : vector<16x128xf32>
    %41 = arith.truncf %37 : vector<16x128xf32> to vector<16x128xbf16>
    %c0_22 = arith.constant 0 : index
    %c0_23 = arith.constant 0 : index
    %c0_24 = arith.constant 0 : index
    %42 = vector.load %arg9[%c0_22, %c0_23, %c0_24] : memref<8x16x128xbf16, #tpu.memory_space<vmem>>, vector<1x16x128xbf16>
    %43 = vector.shape_cast %42 : vector<1x16x128xbf16> to vector<16x128xbf16>
    %44 = vector.shape_cast %41 : vector<16x128xbf16> to vector<1x16x128xbf16>
    tpu.vector_store %arg9[%c0_22, %c0_23, %c0_24], %44 {strides = array<i32>} : memref<8x16x128xbf16, #tpu.memory_space<vmem>>, vector<1x16x128xbf16>,
    %45 = vector.extract_strided_slice %10 {offsets = [16, 0], sizes = [16, 128], strides = [1, 1]} : vector<128x128xf32> to vector<16x128xf32>
    %cst_25 = arith.constant 0.899999976 : f32
    %46 = vector.broadcast %cst_25 : f32 to vector<16x128xf32>
    %47 = arith.mulf %46, %25 : vector<16x128xf32>
    %48 = arith.addf %47, %45 : vector<16x128xf32>
    %cst_26 = arith.constant 1.000000e+00 : f32
    %49 = vector.broadcast %cst_26 : f32 to vector<16x128xf32>
    %50 = arith.cmpf ogt, %48, %49 : vector<16x128xf32>
    %51 = arith.extui %50 : vector<16x128xi1> to vector<16x128xi32>
    %52 = arith.sitofp %51 : vector<16x128xi32> to vector<16x128xf32>
    %cst_27 = arith.constant 1.000000e+00 : f32
    %53 = vector.broadcast %cst_27 : f32 to vector<16x128xf32>
    %54 = arith.mulf %52, %53 : vector<16x128xf32>
    %55 = arith.subf %48, %54 : vector<16x128xf32>
    %56 = arith.truncf %52 : vector<16x128xf32> to vector<16x128xbf16>
    %cst_28 = arith.constant dense<0.000000e+00> : vector<16x128xf32>
    %57 = tpu.matmul %56, %11, %cst_28 {dimension_numbers = #tpu.dot_dimension_numbers<[1], [0], [0], [1], [0, 0, 1, 1], [], []>} : vector<16x128xbf16>, vector<128x128xbf16>, vector<16x128xf32> -> vector<16x128xf32>
    %58 = vector.broadcast %12 : vector<1x128xf32> to vector<16x128xf32>
    %59 = arith.addf %57, %58 : vector<16x128xf32>
    %cst_29 = arith.constant 0.899999976 : f32
    %60 = vector.broadcast %cst_29 : f32 to vector<16x128xf32>
    %61 = arith.mulf %60, %40 : vector<16x128xf32>
    %62 = arith.addf %59, %45 : vector<16x128xf32>
    %63 = arith.addf %61, %62 : vector<16x128xf32>
    %cst_30 = arith.constant 1.000000e+00 : f32
    %64 = vector.broadcast %cst_30 : f32 to vector<16x128xf32>
    %65 = arith.cmpf ogt, %63, %64 : vector<16x128xf32>
    %66 = arith.extui %65 : vector<16x128xi1> to vector<16x128xi32>
    %67 = arith.sitofp %66 : vector<16x128xi32> to vector<16x128xf32>
    %cst_31 = arith.constant 1.000000e+00 : f32
    %68 = vector.broadcast %cst_31 : f32 to vector<16x128xf32>
    %69 = arith.mulf %67, %68 : vector<16x128xf32>
    %70 = arith.subf %63, %69 : vector<16x128xf32>
    %71 = arith.truncf %67 : vector<16x128xf32> to vector<16x128xbf16>
    %c1 = arith.constant 1 : index
    %c0_32 = arith.constant 0 : index
    %c0_33 = arith.constant 0 : index
    %72 = vector.load %arg9[%c1, %c0_32, %c0_33] : memref<8x16x128xbf16, #tpu.memory_space<vmem>>, vector<1x16x128xbf16>
    %73 = vector.shape_cast %72 : vector<1x16x128xbf16> to vector<16x128xbf16>
    %74 = vector.shape_cast %71 : vector<16x128xbf16> to vector<1x16x128xbf16>
    tpu.vector_store %arg9[%c1, %c0_32, %c0_33], %74 {strides = array<i32>} : memref<8x16x128xbf16, #tpu.memory_space<vmem>>, vector<1x16x128xbf16>,
    %75 = vector.extract_strided_slice %10 {offsets = [32, 0], sizes = [16, 128], strides = [1, 1]} : vector<128x128xf32> to vector<16x128xf32>
    %cst_34 = arith.constant 0.899999976 : f32
    %76 = vector.broadcast %cst_34 : f32 to vector<16x128xf32>
    %77 = arith.mulf %76, %55 : vector<16x128xf32>
    %78 = arith.addf %77, %75 : vector<16x128xf32>
    %cst_35 = arith.constant 1.000000e+00 : f32
    %79 = vector.broadcast %cst_35 : f32 to vector<16x128xf32>
    %80 = arith.cmpf ogt, %78, %79 : vector<16x128xf32>
    %81 = arith.extui %80 : vector<16x128xi1> to vector<16x128xi32>
    %82 = arith.sitofp %81 : vector<16x128xi32> to vector<16x128xf32>
    %cst_36 = arith.constant 1.000000e+00 : f32
    %83 = vector.broadcast %cst_36 : f32 to vector<16x128xf32>
    %84 = arith.mulf %82, %83 : vector<16x128xf32>
    %85 = arith.subf %78, %84 : vector<16x128xf32>
    %86 = arith.truncf %82 : vector<16x128xf32> to vector<16x128xbf16>
    %cst_37 = arith.constant dense<0.000000e+00> : vector<16x128xf32>
    %87 = tpu.matmul %86, %11, %cst_37 {dimension_numbers = #tpu.dot_dimension_numbers<[1], [0], [0], [1], [0, 0, 1, 1], [], []>} : vector<16x128xbf16>, vector<128x128xbf16>, vector<16x128xf32> -> vector<16x128xf32>
    %88 = vector.broadcast %12 : vector<1x128xf32> to vector<16x128xf32>
    %89 = arith.addf %87, %88 : vector<16x128xf32>
    %cst_38 = arith.constant 0.899999976 : f32
    %90 = vector.broadcast %cst_38 : f32 to vector<16x128xf32>
    %91 = arith.mulf %90, %70 : vector<16x128xf32>
    %92 = arith.addf %89, %75 : vector<16x128xf32>
    %93 = arith.addf %91, %92 : vector<16x128xf32>
    %cst_39 = arith.constant 1.000000e+00 : f32
    %94 = vector.broadcast %cst_39 : f32 to vector<16x128xf32>
    %95 = arith.cmpf ogt, %93, %94 : vector<16x128xf32>
    %96 = arith.extui %95 : vector<16x128xi1> to vector<16x128xi32>
    %97 = arith.sitofp %96 : vector<16x128xi32> to vector<16x128xf32>
    %cst_40 = arith.constant 1.000000e+00 : f32
    %98 = vector.broadcast %cst_40 : f32 to vector<16x128xf32>
    %99 = arith.mulf %97, %98 : vector<16x128xf32>
    %100 = arith.subf %93, %99 : vector<16x128xf32>
    %101 = arith.truncf %97 : vector<16x128xf32> to vector<16x128xbf16>
    %c2 = arith.constant 2 : index
    %c0_41 = arith.constant 0 : index
    %c0_42 = arith.constant 0 : index
    %102 = vector.load %arg9[%c2, %c0_41, %c0_42] : memref<8x16x128xbf16, #tpu.memory_space<vmem>>, vector<1x16x128xbf16>
    %103 = vector.shape_cast %102 : vector<1x16x128xbf16> to vector<16x128xbf16>
    %104 = vector.shape_cast %101 : vector<16x128xbf16> to vector<1x16x128xbf16>
    tpu.vector_store %arg9[%c2, %c0_41, %c0_42], %104 {strides = array<i32>} : memref<8x16x128xbf16, #tpu.memory_space<vmem>>, vector<1x16x128xbf16>,
    %105 = vector.extract_strided_slice %10 {offsets = [48, 0], sizes = [16, 128], strides = [1, 1]} : vector<128x128xf32> to vector<16x128xf32>
    %cst_43 = arith.constant 0.899999976 : f32
    %106 = vector.broadcast %cst_43 : f32 to vector<16x128xf32>
    %107 = arith.mulf %106, %85 : vector<16x128xf32>
    %108 = arith.addf %107, %105 : vector<16x128xf32>
    %cst_44 = arith.constant 1.000000e+00 : f32
    %109 = vector.broadcast %cst_44 : f32 to vector<16x128xf32>
    %110 = arith.cmpf ogt, %108, %109 : vector<16x128xf32>
    %111 = arith.extui %110 : vector<16x128xi1> to vector<16x128xi32>
    %112 = arith.sitofp %111 : vector<16x128xi32> to vector<16x128xf32>
    %cst_45 = arith.constant 1.000000e+00 : f32
    %113 = vector.broadcast %cst_45 : f32 to vector<16x128xf32>
    %114 = arith.mulf %112, %113 : vector<16x128xf32>
    %115 = arith.subf %108, %114 : vector<16x128xf32>
    %116 = arith.truncf %112 : vector<16x128xf32> to vector<16x128xbf16>
    %cst_46 = arith.constant dense<0.000000e+00> : vector<16x128xf32>
    %117 = tpu.matmul %116, %11, %cst_46 {dimension_numbers = #tpu.dot_dimension_numbers<[1], [0], [0], [1], [0, 0, 1, 1], [], []>} : vector<16x128xbf16>, vector<128x128xbf16>, vector<16x128xf32> -> vector<16x128xf32>
    %118 = vector.broadcast %12 : vector<1x128xf32> to vector<16x128xf32>
    %119 = arith.addf %117, %118 : vector<16x128xf32>
    %cst_47 = arith.constant 0.899999976 : f32
    %120 = vector.broadcast %cst_47 : f32 to vector<16x128xf32>
    %121 = arith.mulf %120, %100 : vector<16x128xf32>
    %122 = arith.addf %119, %105 : vector<16x128xf32>
    %123 = arith.addf %121, %122 : vector<16x128xf32>
    %cst_48 = arith.constant 1.000000e+00 : f32
    %124 = vector.broadcast %cst_48 : f32 to vector<16x128xf32>
    %125 = arith.cmpf ogt, %123, %124 : vector<16x128xf32>
    %126 = arith.extui %125 : vector<16x128xi1> to vector<16x128xi32>
    %127 = arith.sitofp %126 : vector<16x128xi32> to vector<16x128xf32>
    %cst_49 = arith.constant 1.000000e+00 : f32
    %128 = vector.broadcast %cst_49 : f32 to vector<16x128xf32>
    %129 = arith.mulf %127, %128 : vector<16x128xf32>
    %130 = arith.subf %123, %129 : vector<16x128xf32>
    %131 = arith.truncf %127 : vector<16x128xf32> to vector<16x128xbf16>
    %c3 = arith.constant 3 : index
    %c0_50 = arith.constant 0 : index
    %c0_51 = arith.constant 0 : index
    %132 = vector.load %arg9[%c3, %c0_50, %c0_51] : memref<8x16x128xbf16, #tpu.memory_space<vmem>>, vector<1x16x128xbf16>
    %133 = vector.shape_cast %132 : vector<1x16x128xbf16> to vector<16x128xbf16>
    %134 = vector.shape_cast %131 : vector<16x128xbf16> to vector<1x16x128xbf16>
    tpu.vector_store %arg9[%c3, %c0_50, %c0_51], %134 {strides = array<i32>} : memref<8x16x128xbf16, #tpu.memory_space<vmem>>, vector<1x16x128xbf16>,
    %135 = vector.extract_strided_slice %10 {offsets = [64, 0], sizes = [16, 128], strides = [1, 1]} : vector<128x128xf32> to vector<16x128xf32>
    %cst_52 = arith.constant 0.899999976 : f32
    %136 = vector.broadcast %cst_52 : f32 to vector<16x128xf32>
    %137 = arith.mulf %136, %115 : vector<16x128xf32>
    %138 = arith.addf %137, %135 : vector<16x128xf32>
    %cst_53 = arith.constant 1.000000e+00 : f32
    %139 = vector.broadcast %cst_53 : f32 to vector<16x128xf32>
    %140 = arith.cmpf ogt, %138, %139 : vector<16x128xf32>
    %141 = arith.extui %140 : vector<16x128xi1> to vector<16x128xi32>
    %142 = arith.sitofp %141 : vector<16x128xi32> to vector<16x128xf32>
    %cst_54 = arith.constant 1.000000e+00 : f32
    %143 = vector.broadcast %cst_54 : f32 to vector<16x128xf32>
    %144 = arith.mulf %142, %143 : vector<16x128xf32>
    %145 = arith.subf %138, %144 : vector<16x128xf32>
    %146 = arith.truncf %142 : vector<16x128xf32> to vector<16x128xbf16>
    %cst_55 = arith.constant dense<0.000000e+00> : vector<16x128xf32>
    %147 = tpu.matmul %146, %11, %cst_55 {dimension_numbers = #tpu.dot_dimension_numbers<[1], [0], [0], [1], [0, 0, 1, 1], [], []>} : vector<16x128xbf16>, vector<128x128xbf16>, vector<16x128xf32> -> vector<16x128xf32>
    %148 = vector.broadcast %12 : vector<1x128xf32> to vector<16x128xf32>
    %149 = arith.addf %147, %148 : vector<16x128xf32>
    %cst_56 = arith.constant 0.899999976 : f32
    %150 = vector.broadcast %cst_56 : f32 to vector<16x128xf32>
    %151 = arith.mulf %150, %130 : vector<16x128xf32>
    %152 = arith.addf %149, %135 : vector<16x128xf32>
    %153 = arith.addf %151, %152 : vector<16x128xf32>
    %cst_57 = arith.constant 1.000000e+00 : f32
    %154 = vector.broadcast %cst_57 : f32 to vector<16x128xf32>
    %155 = arith.cmpf ogt, %153, %154 : vector<16x128xf32>
    %156 = arith.extui %155 : vector<16x128xi1> to vector<16x128xi32>
    %157 = arith.sitofp %156 : vector<16x128xi32> to vector<16x128xf32>
    %cst_58 = arith.constant 1.000000e+00 : f32
    %158 = vector.broadcast %cst_58 : f32 to vector<16x128xf32>
    %159 = arith.mulf %157, %158 : vector<16x128xf32>
    %160 = arith.subf %153, %159 : vector<16x128xf32>
    %161 = arith.truncf %157 : vector<16x128xf32> to vector<16x128xbf16>
    %c4 = arith.constant 4 : index
    %c0_59 = arith.constant 0 : index
    %c0_60 = arith.constant 0 : index
    %162 = vector.load %arg9[%c4, %c0_59, %c0_60] : memref<8x16x128xbf16, #tpu.memory_space<vmem>>, vector<1x16x128xbf16>
    %163 = vector.shape_cast %162 : vector<1x16x128xbf16> to vector<16x128xbf16>
    %164 = vector.shape_cast %161 : vector<16x128xbf16> to vector<1x16x128xbf16>
    tpu.vector_store %arg9[%c4, %c0_59, %c0_60], %164 {strides = array<i32>} : memref<8x16x128xbf16, #tpu.memory_space<vmem>>, vector<1x16x128xbf16>,
    %165 = vector.extract_strided_slice %10 {offsets = [80, 0], sizes = [16, 128], strides = [1, 1]} : vector<128x128xf32> to vector<16x128xf32>
    %cst_61 = arith.constant 0.899999976 : f32
    %166 = vector.broadcast %cst_61 : f32 to vector<16x128xf32>
    %167 = arith.mulf %166, %145 : vector<16x128xf32>
    %168 = arith.addf %167, %165 : vector<16x128xf32>
    %cst_62 = arith.constant 1.000000e+00 : f32
    %169 = vector.broadcast %cst_62 : f32 to vector<16x128xf32>
    %170 = arith.cmpf ogt, %168, %169 : vector<16x128xf32>
    %171 = arith.extui %170 : vector<16x128xi1> to vector<16x128xi32>
    %172 = arith.sitofp %171 : vector<16x128xi32> to vector<16x128xf32>
    %cst_63 = arith.constant 1.000000e+00 : f32
    %173 = vector.broadcast %cst_63 : f32 to vector<16x128xf32>
    %174 = arith.mulf %172, %173 : vector<16x128xf32>
    %175 = arith.subf %168, %174 : vector<16x128xf32>
    %176 = arith.truncf %172 : vector<16x128xf32> to vector<16x128xbf16>
    %cst_64 = arith.constant dense<0.000000e+00> : vector<16x128xf32>
    %177 = tpu.matmul %176, %11, %cst_64 {dimension_numbers = #tpu.dot_dimension_numbers<[1], [0], [0], [1], [0, 0, 1, 1], [], []>} : vector<16x128xbf16>, vector<128x128xbf16>, vector<16x128xf32> -> vector<16x128xf32>
    %178 = vector.broadcast %12 : vector<1x128xf32> to vector<16x128xf32>
    %179 = arith.addf %177, %178 : vector<16x128xf32>
    %cst_65 = arith.constant 0.899999976 : f32
    %180 = vector.broadcast %cst_65 : f32 to vector<16x128xf32>
    %181 = arith.mulf %180, %160 : vector<16x128xf32>
    %182 = arith.addf %179, %165 : vector<16x128xf32>
    %183 = arith.addf %181, %182 : vector<16x128xf32>
    %cst_66 = arith.constant 1.000000e+00 : f32
    %184 = vector.broadcast %cst_66 : f32 to vector<16x128xf32>
    %185 = arith.cmpf ogt, %183, %184 : vector<16x128xf32>
    %186 = arith.extui %185 : vector<16x128xi1> to vector<16x128xi32>
    %187 = arith.sitofp %186 : vector<16x128xi32> to vector<16x128xf32>
    %cst_67 = arith.constant 1.000000e+00 : f32
    %188 = vector.broadcast %cst_67 : f32 to vector<16x128xf32>
    %189 = arith.mulf %187, %188 : vector<16x128xf32>
    %190 = arith.subf %183, %189 : vector<16x128xf32>
    %191 = arith.truncf %187 : vector<16x128xf32> to vector<16x128xbf16>
    %c5 = arith.constant 5 : index
    %c0_68 = arith.constant 0 : index
    %c0_69 = arith.constant 0 : index
    %192 = vector.load %arg9[%c5, %c0_68, %c0_69] : memref<8x16x128xbf16, #tpu.memory_space<vmem>>, vector<1x16x128xbf16>
    %193 = vector.shape_cast %192 : vector<1x16x128xbf16> to vector<16x128xbf16>
    %194 = vector.shape_cast %191 : vector<16x128xbf16> to vector<1x16x128xbf16>
    tpu.vector_store %arg9[%c5, %c0_68, %c0_69], %194 {strides = array<i32>} : memref<8x16x128xbf16, #tpu.memory_space<vmem>>, vector<1x16x128xbf16>,
    %195 = vector.extract_strided_slice %10 {offsets = [96, 0], sizes = [16, 128], strides = [1, 1]} : vector<128x128xf32> to vector<16x128xf32>
    %cst_70 = arith.constant 0.899999976 : f32
    %196 = vector.broadcast %cst_70 : f32 to vector<16x128xf32>
    %197 = arith.mulf %196, %175 : vector<16x128xf32>
    %198 = arith.addf %197, %195 : vector<16x128xf32>
    %cst_71 = arith.constant 1.000000e+00 : f32
    %199 = vector.broadcast %cst_71 : f32 to vector<16x128xf32>
    %200 = arith.cmpf ogt, %198, %199 : vector<16x128xf32>
    %201 = arith.extui %200 : vector<16x128xi1> to vector<16x128xi32>
    %202 = arith.sitofp %201 : vector<16x128xi32> to vector<16x128xf32>
    %cst_72 = arith.constant 1.000000e+00 : f32
    %203 = vector.broadcast %cst_72 : f32 to vector<16x128xf32>
    %204 = arith.mulf %202, %203 : vector<16x128xf32>
    %205 = arith.subf %198, %204 : vector<16x128xf32>
    %206 = arith.truncf %202 : vector<16x128xf32> to vector<16x128xbf16>
    %cst_73 = arith.constant dense<0.000000e+00> : vector<16x128xf32>
    %207 = tpu.matmul %206, %11, %cst_73 {dimension_numbers = #tpu.dot_dimension_numbers<[1], [0], [0], [1], [0, 0, 1, 1], [], []>} : vector<16x128xbf16>, vector<128x128xbf16>, vector<16x128xf32> -> vector<16x128xf32>
    %208 = vector.broadcast %12 : vector<1x128xf32> to vector<16x128xf32>
    %209 = arith.addf %207, %208 : vector<16x128xf32>
    %cst_74 = arith.constant 0.899999976 : f32
    %210 = vector.broadcast %cst_74 : f32 to vector<16x128xf32>
    %211 = arith.mulf %210, %190 : vector<16x128xf32>
    %212 = arith.addf %209, %195 : vector<16x128xf32>
    %213 = arith.addf %211, %212 : vector<16x128xf32>
    %cst_75 = arith.constant 1.000000e+00 : f32
    %214 = vector.broadcast %cst_75 : f32 to vector<16x128xf32>
    %215 = arith.cmpf ogt, %213, %214 : vector<16x128xf32>
    %216 = arith.extui %215 : vector<16x128xi1> to vector<16x128xi32>
    %217 = arith.sitofp %216 : vector<16x128xi32> to vector<16x128xf32>
    %cst_76 = arith.constant 1.000000e+00 : f32
    %218 = vector.broadcast %cst_76 : f32 to vector<16x128xf32>
    %219 = arith.mulf %217, %218 : vector<16x128xf32>
    %220 = arith.subf %213, %219 : vector<16x128xf32>
    %221 = arith.truncf %217 : vector<16x128xf32> to vector<16x128xbf16>
    %c6 = arith.constant 6 : index
    %c0_77 = arith.constant 0 : index
    %c0_78 = arith.constant 0 : index
    %222 = vector.load %arg9[%c6, %c0_77, %c0_78] : memref<8x16x128xbf16, #tpu.memory_space<vmem>>, vector<1x16x128xbf16>
    %223 = vector.shape_cast %222 : vector<1x16x128xbf16> to vector<16x128xbf16>
    %224 = vector.shape_cast %221 : vector<16x128xbf16> to vector<1x16x128xbf16>
    tpu.vector_store %arg9[%c6, %c0_77, %c0_78], %224 {strides = array<i32>} : memref<8x16x128xbf16, #tpu.memory_space<vmem>>, vector<1x16x128xbf16>,
    %225 = vector.extract_strided_slice %10 {offsets = [112, 0], sizes = [16, 128], strides = [1, 1]} : vector<128x128xf32> to vector<16x128xf32>
    %cst_79 = arith.constant 0.899999976 : f32
    %226 = vector.broadcast %cst_79 : f32 to vector<16x128xf32>
    %227 = arith.mulf %226, %205 : vector<16x128xf32>
    %228 = arith.addf %227, %225 : vector<16x128xf32>
    %cst_80 = arith.constant 1.000000e+00 : f32
    %229 = vector.broadcast %cst_80 : f32 to vector<16x128xf32>
    %230 = arith.cmpf ogt, %228, %229 : vector<16x128xf32>
    %231 = arith.extui %230 : vector<16x128xi1> to vector<16x128xi32>
    %232 = arith.sitofp %231 : vector<16x128xi32> to vector<16x128xf32>
    %cst_81 = arith.constant 1.000000e+00 : f32
    %233 = vector.broadcast %cst_81 : f32 to vector<16x128xf32>
    %234 = arith.mulf %232, %233 : vector<16x128xf32>
    %235 = arith.subf %228, %234 : vector<16x128xf32>
    %236 = arith.truncf %232 : vector<16x128xf32> to vector<16x128xbf16>
    %cst_82 = arith.constant dense<0.000000e+00> : vector<16x128xf32>
    %237 = tpu.matmul %236, %11, %cst_82 {dimension_numbers = #tpu.dot_dimension_numbers<[1], [0], [0], [1], [0, 0, 1, 1], [], []>} : vector<16x128xbf16>, vector<128x128xbf16>, vector<16x128xf32> -> vector<16x128xf32>
    %238 = vector.broadcast %12 : vector<1x128xf32> to vector<16x128xf32>
    %239 = arith.addf %237, %238 : vector<16x128xf32>
    %cst_83 = arith.constant 0.899999976 : f32
    %240 = vector.broadcast %cst_83 : f32 to vector<16x128xf32>
    %241 = arith.mulf %240, %220 : vector<16x128xf32>
    %242 = arith.addf %239, %225 : vector<16x128xf32>
    %243 = arith.addf %241, %242 : vector<16x128xf32>
    %cst_84 = arith.constant 1.000000e+00 : f32
    %244 = vector.broadcast %cst_84 : f32 to vector<16x128xf32>
    %245 = arith.cmpf ogt, %243, %244 : vector<16x128xf32>
    %246 = arith.extui %245 : vector<16x128xi1> to vector<16x128xi32>
    %247 = arith.sitofp %246 : vector<16x128xi32> to vector<16x128xf32>
    %cst_85 = arith.constant 1.000000e+00 : f32
    %248 = vector.broadcast %cst_85 : f32 to vector<16x128xf32>
    %249 = arith.mulf %247, %248 : vector<16x128xf32>
    %250 = arith.subf %243, %249 : vector<16x128xf32>
    %251 = arith.truncf %247 : vector<16x128xf32> to vector<16x128xbf16>
    %c7 = arith.constant 7 : index
    %c0_86 = arith.constant 0 : index
    %c0_87 = arith.constant 0 : index
    %252 = vector.load %arg9[%c7, %c0_86, %c0_87] : memref<8x16x128xbf16, #tpu.memory_space<vmem>>, vector<1x16x128xbf16>
    %253 = vector.shape_cast %252 : vector<1x16x128xbf16> to vector<16x128xbf16>
    %254 = vector.shape_cast %251 : vector<16x128xbf16> to vector<1x16x128xbf16>
    tpu.vector_store %arg9[%c7, %c0_86, %c0_87], %254 {strides = array<i32>} : memref<8x16x128xbf16, #tpu.memory_space<vmem>>, vector<1x16x128xbf16>,
    %c0_88 = arith.constant 0 : index
    %c0_89 = arith.constant 0 : index
    %255 = vector.load %arg10[%c0_88, %c0_89] : memref<16x128xf32, #tpu.memory_space<vmem>>, vector<16x128xf32>
    tpu.vector_store %arg10[%c0_88, %c0_89], %235 {strides = array<i32>} : memref<16x128xf32, #tpu.memory_space<vmem>>, vector<16x128xf32>,
    %c0_90 = arith.constant 0 : index
    %c0_91 = arith.constant 0 : index
    %256 = vector.load %arg11[%c0_90, %c0_91] : memref<16x128xf32, #tpu.memory_space<vmem>>, vector<16x128xf32>
    tpu.vector_store %arg11[%c0_90, %c0_91], %250 {strides = array<i32>} : memref<16x128xf32, #tpu.memory_space<vmem>>, vector<16x128xf32>,
    return
  }
  func.func @transform_0(%arg0: i32, %arg1: i32) -> (i32, i32, i32) {
    %c0_i32 = arith.constant 0 : i32
    %c0_i32_0 = arith.constant 0 : i32
    return %arg1, %arg0, %c0_i32 : i32, i32, i32
  }
  func.func @transform_1(%arg0: i32, %arg1: i32) -> (i32, i32) {
    %c0_i32 = arith.constant 0 : i32
    %c0_i32_0 = arith.constant 0 : i32
    %c0_i32_1 = arith.constant 0 : i32
    return %c0_i32, %c0_i32_0 : i32, i32
  }
  func.func @transform_2(%arg0: i32, %arg1: i32) -> (i32, i32) {
    %c0_i32 = arith.constant 0 : i32
    %c0_i32_0 = arith.constant 0 : i32
    %c0_i32_1 = arith.constant 0 : i32
    return %c0_i32, %c0_i32_0 : i32, i32
  }
  func.func @transform_3(%arg0: i32, %arg1: i32) -> (i32, i32) {
    %c0_i32 = arith.constant 0 : i32
    %c0_i32_0 = arith.constant 0 : i32
    %c0_i32_1 = arith.constant 0 : i32
    return %c0_i32, %c0_i32_0 : i32, i32
  }
  func.func @transform_4(%arg0: i32, %arg1: i32) -> (i32, i32) {
    %c0_i32 = arith.constant 0 : i32
    %c0_i32_0 = arith.constant 0 : i32
    %c0_i32_1 = arith.constant 0 : i32
    return %c0_i32, %c0_i32_0 : i32, i32
  }
  func.func @transform_5(%arg0: i32, %arg1: i32) -> (i32, i32) {
    %c0_i32 = arith.constant 0 : i32
    %c0_i32_0 = arith.constant 0 : i32
    return %arg0, %c0_i32 : i32, i32
  }
  func.func @transform_6(%arg0: i32, %arg1: i32) -> (i32, i32) {
    %c0_i32 = arith.constant 0 : i32
    %c0_i32_0 = arith.constant 0 : i32
    return %arg0, %c0_i32 : i32, i32
  }
  func.func @transform_7(%arg0: i32, %arg1: i32) -> (i32, i32, i32) {
    %c0_i32 = arith.constant 0 : i32
    %c0_i32_0 = arith.constant 0 : i32
    return %arg1, %arg0, %c0_i32 : i32, i32, i32
  }
  func.func @transform_8(%arg0: i32, %arg1: i32) -> (i32, i32) {
    %c0_i32 = arith.constant 0 : i32
    %c0_i32_0 = arith.constant 0 : i32
    return %arg0, %c0_i32 : i32, i32
  }
  func.func @transform_9(%arg0: i32, %arg1: i32) -> (i32, i32) {
    %c0_i32 = arith.constant 0 : i32
    %c0_i32_0 = arith.constant 0 : i32
    return %arg0, %c0_i32 : i32, i32
  }
}

</mosaic_0001>

<bundles_post_ra>
// kernel: tpu_custom_call.1
= control target key start
LH: loop header
LB: loop body
LE: loop exit
PB: predicated region body
PF: predicated region fallthrough
CT: control target
= control target key end

     0   :  { %s3260_s0 = inlined_call_operand.hbm [shape: f32[16,16,128], index: 0, kind: input, shape index: {}]   ;;  %s3261_s1 = inlined_call_operand.vmem [shape: bf16[128,128], index: 1, kind: input, shape index: {}]   ;;  %s3262_s2 = inlined_call_operand.vmem [shape: f32[1,128], index: 2, kind: input, shape index: {}]   ;;  %s3263_s3 = inlined_call_operand.hbm [shape: bf16[128,128], index: 3, kind: input, shape index: {}]   ;;  %s3264_s4 = inlined_call_operand.vmem [shape: f32[1,128], index: 4, kind: input, shape index: {}]   ;;  %s3265_s5 = inlined_call_operand.hbm [shape: f32[16,128], index: 5, kind: input, shape index: {}, may-alias: {5,8}]   ;;  %s3266_s6 = inlined_call_operand.hbm [shape: f32[16,128], index: 6, kind: input, shape index: {}, may-alias: {6,9}]   ;;  %s3267_s7 = inlined_call_operand.hbm [shape: bf16[16,16,128], index: 7, kind: output, shape index: {0}]   ;;  %s3268_s8 = inlined_call_operand.hbm [shape: f32[16,128], index: 8, kind: output, shape index: {1}, may-alias: {5,8}]   ;;  %s3269_s9 = inlined_call_operand.hbm [shape: f32[16,128], index: 9, kind: output, shape index: {2}, may-alias: {6,9}]  }
   0x1   :  { %3279 = sst [smem:[#allocation21_spill]] %s3263_s3 }
   0x2   :  { %3280 = sst [smem:[#allocation22_spill]] %s3264_s4 }
   0x3   :  { %3281 = sst [smem:[#allocation23_spill]] %s3267_s7 }
   0x4   :  { %3282 = sst [smem:[#allocation24_spill]] %s3269_s9 }
   0x5   :  { %15 = vsyncpa [#allocation3], 0 }
   0x6   :  { %17 = vsyncpa [#allocation3 + $0x1], 0 }
   0x7   :  { %18 = vsyncpa [#allocation6], 0 }
   0x8   :  { %19 = vsyncpa [#allocation9], 0 }
   0x9   :  { %20 = vsyncpa [#allocation4], 0 }
   0xa   :  { %22 = vsyncpa [#allocation4 + $0x1], 0 }
   0xb   :  { %23 = vsyncpa [#allocation12], 0  ;;  %s2472_s30 = smov 0   ;;  %s2474_s10 = smov 0  }
   0xc   :  { %s2476_s11 = smov 0   ;;  %s2478_s12 = smov 0  }
   0xd   :  { %s2480_s13 = smov 0   ;;  %s2482_s14 = smov 0  }
   0xe LB: > { %3283 = sst [smem:[#allocation19_spill]] %s2382_s30  ;;  %s1553_s15 = sadd.s32 4294967295, %s2402_s14   ;;  %s2402_s14 = sphi %s2482_s14, %s29_s14   ;;  %s2398_s13 = sphi %s2480_s13, %s3312_s13   ;;  %s2394_s12 = sphi %s2478_s12, %s3311_s12   ;;  %s2390_s11 = sphi %s2476_s11, %s3310_s11   ;;  %s2386_s10 = sphi %s2474_s10, %s3309_s10   ;;  %s2382_s30 = sphi %s2472_s30, %s3308_s30  }
   0xf   : > { %s1554_s16 = sadd.s32 4294967294, %s2402_s14   ;;  %p63_p0 = scmp.ne.s32.totalorder %s2386_s10, %s2382_s30 }
  0x10   : > { %p2506_p1 = scmp.eq.s32.totalorder %s1553_s15, 0  ;;  %p2510_p2 = scmp.eq.s32.totalorder %s1553_s15, 1 }
  0x11   : > { %p231_p3 = scmp.eq.s32.totalorder %s1554_s16, 1  ;;  %p1555_p5 = scmp.ge.s32.totalorder %s2402_s14, 1 }
  0x12   : > { %s3284_s17 = scalar_select %p2506_p1, 1, 0 }
  0x13   : > { %s3285_s18 = scalar_select %p2510_p2, 1, 0 }
  0x14   : > { %p2516_p4 = por %p2506_p1, %p63_p0  ;;  %p2521_p6 = por %p231_p3, %p63_p0 }
  0x15   : > { %p290_p7 = scmp.lt.s32.totalorder %s2402_s14, 3  ;;  %s2404_s22 = smov [#allocation5]  }
  0x16   : > { %s3286_s19 = scalar_select %p2516_p4, 1, 0 }
  0x17   : > { %s3287_s20 = scalar_select %p2521_p6, 1, 0 }
  0x18   : > { %p2526_p8 = pnand %p1555_p5, %p290_p7  ;;  %s308_s23 = sshll.u32 %s2404_s22, 4  ;;  %s2530_s23 = int_to_ptr.vmem [resolvable:$true] %s308_s23 }
  0x19   : > { %3288 = sst [smem:[#allocation20_spill]] %s3287_s20  ;;  %s2405_s25 = smov [#allocation7]  }
  0x1a   : > { %s3289_s21 = scalar_select %p2526_p8, 1, 0 }
  0x1b   : > { %p2032_p9 = pneg %p2526_p8  ;;  %s327_s26 = sshll.u32 %s2405_s25, 4  ;;  %s2541_s26 = int_to_ptr.vmem [resolvable:$true] %s327_s26 }
  0x1c   : > { %s3291_s3 = sld [smem:[#allocation21_spill]] }
  0x1d   : > { %p2537_p11 = pnand %p2032_p9, %p2506_p1 }
  0x1f   : > { %p2551_p13 = pneg %p2537_p11 }
  0x22   : > { %s2142_s29 = scalar_lea.hbm %s3291_s3, 1024 }
  0x23   : > { %p2143_p12 = scmp.ne.s32.totalorder %s3291_s3, %s2142_s29  ;;  %p2149_p5 = scmp.lt.u32.totalorder %s2142_s29, %s3291_s3 }
  0x25   : > { %p2145_p0 = pnand %p2551_p13, %p2143_p12 }
  0x27   : > { %p2146_p3 = pneg %p2145_p0 }
  0x29   : > { %p2151_p7 = pnand %p2149_p5, %p2146_p3 }
  0x2b   : > { %2154 = shalt.err (!%p2151_p7)
}
  0x2c   : > { %s2155_s27 = scalar_lea.vmem %s2530_s23, 1024  ;;  %p2163_p1 = scmp.lt.s32.totalorder %s2530_s23, %s2530_s23 }
  0x2d   : > { %p2156_p9 = scmp.ne.s32.totalorder %s2530_s23, %s2155_s27  ;;  %p2164_p4 = scmp.lt.s32.totalorder %s2155_s27, %s2155_s27 }
  0x2f   : > { %p2158_p10 = pnand %p2156_p9, %p2551_p13  ;;  %p2165_p12 = por %p2164_p4, %p2163_p1 }
  0x31   : > { %p2159_p6 = pneg %p2158_p10 }
  0x33   : > { %p2166_p0 = pnand %p2165_p12, %p2159_p6 }
  0x35   : > { %2169 = shalt.err (!%p2166_p0)
}
  0x36   : > { %s2406_s28 = smov 64   ;;  %s2407_s20 = smov 4  }
  0x37   : > { %2035 = dma.hbm_to_vmem [thread:$0]  (!%p2537_p11), %s3291_s3, 1024, %s2530_s23, [#allocation6], %s2406_s28, %s2406_s28, %s2407_s20  }
  0x38   : > { %s2170_s30 = scalar_lea.hbm %s3265_s5, 256 }
  0x39   : > { %p2171_p1 = scmp.ne.s32.totalorder %s3265_s5, %s2170_s30  ;;  %p2177_p10 = scmp.lt.u32.totalorder %s2170_s30, %s3265_s5 }
  0x3b   : > { %p2173_p4 = pnand %p2171_p1, %p2551_p13 }
  0x3d   : > { %p2174_p6 = pneg %p2173_p4 }
  0x3f   : > { %p2179_p3 = pnand %p2177_p10, %p2174_p6 }
  0x41   : > { %2182 = shalt.err (!%p2179_p3)
}
  0x42   : > { %s2183_s23 = scalar_lea.vmem %s2541_s26, 256  ;;  %p2191_p12 = scmp.lt.s32.totalorder %s2541_s26, %s2541_s26 }
  0x43   : > { %p2184_p5 = scmp.ne.s32.totalorder %s2541_s26, %s2183_s23  ;;  %p2192_p0 = scmp.lt.s32.totalorder %s2183_s23, %s2183_s23 }
  0x45   : > { %p2186_p7 = pnand %p2184_p5, %p2551_p13  ;;  %p2193_p1 = por %p2192_p0, %p2191_p12 }
  0x47   : > { %p2187_p9 = pneg %p2186_p7 }
  0x49   : > { %p2194_p4 = pnand %p2193_p1, %p2187_p9 }
  0x4b   : > { %2197 = shalt.err (!%p2194_p4)
}
  0x4c   : > { %s2408_s7 = smov 128   ;;  %s2409_s4 = smov 8  }
  0x4d   : > { %2038 = dma.hbm_to_vmem [thread:$0]  (!%p2537_p11), %s3265_s5, 256, %s2541_s26, [#allocation6], %s2408_s7, %s2408_s7, %s2409_s4  }
  0x4e   : > { %s2410_s28 = smov [#allocation8]   ;;  %s2198_s16 = scalar_lea.hbm %s3266_s6, 256 }
  0x4f   : > { %s343_s20 = sshll.u32 %s2410_s28, 4  ;;  %p2199_p6 = scmp.ne.s32.totalorder %s3266_s6, %s2198_s16  ;;  %s344_s20 = int_to_ptr.vmem [resolvable:$true] %s343_s20 }
  0x50   : > { %p2205_p5 = scmp.lt.u32.totalorder %s2198_s16, %s3266_s6 }
  0x51   : > { %p2201_p10 = pnand %p2199_p6, %p2551_p13 }
  0x53   : > { %p2202_p3 = pneg %p2201_p10 }
  0x55   : > { %p2207_p7 = pnand %p2205_p5, %p2202_p3 }
  0x57   : > { %2210 = shalt.err (!%p2207_p7)
}
  0x58   : > { %s2211_s26 = scalar_lea.vmem %s344_s20, 256  ;;  %p2219_p1 = scmp.lt.s32.totalorder %s344_s20, %s344_s20 }
  0x59   : > { %p2212_p9 = scmp.ne.s32.totalorder %s344_s20, %s2211_s26  ;;  %p2220_p4 = scmp.lt.s32.totalorder %s2211_s26, %s2211_s26 }
  0x5b   : > { %p2214_p12 = pnand %p2212_p9, %p2551_p13  ;;  %p2221_p8 = por %p2220_p4, %p2219_p1 }
  0x5d   : > { %p2215_p0 = pneg %p2214_p12 }
  0x5f   : > { %p2222_p2 = pnand %p2221_p8, %p2215_p0 }
  0x61   : > { %2225 = shalt.err (!%p2222_p2)
}
  0x62   : > { %2041 = dma.hbm_to_vmem [thread:$0]  (!%p2537_p11), %s3266_s6, 256, %s344_s20, [#allocation9], %s2408_s7, %s2408_s7, %s2409_s4  }
  0x63   : > { %s38_s22 = sadd.s32 1, %s2398_s13  ;;  %s50_s24 = sadd.s32 1, %s2390_s11 }
  0x64   : > { %p39_p2 = scmp.ge.s32.totalorder %s38_s22, 2  ;;  %p57_p8 = scmp.ne.s32.totalorder %s2390_s11, %s2386_s10 }
  0x65   : > { %p58_p13 = scmp.eq.s32.totalorder %s2402_s14, 0  ;;  %p3294_p10 = scmp.ne.s32.totalorder %s3285_s18, 0 }
  0x66   : > { %s3314_s22 = smov (%p39_p2, %s38_s22), 0  ;;  %p2053_p11 = scmp.lt.s32.totalorder %s2402_s14, 2 }
  0x67   : > { %p2626_p6 = por %p58_p13, %p57_p8  ;;  %p2632_p3 = por %p3294_p10, %p57_p8 }
  0x68   : > { %s45_s29 = ssub.s32 %s2398_s13, %s3314_s22  ;;  %s357_s20 = sand.u32 1, %s2390_s11  }
  0x69   : > { %p48_p5 = scmp.eq.s32.totalorder %s45_s29, 0  ;;  %s1560_s15 = sshll.u32 %s357_s20, 7 }
  0x6a   : > { %s1678_s25 = sshll.u32 %s2398_s13, 11  ;;  %s361_s3 = scalar_lea.vmem [#allocation2], %s1560_s15 }
  0x6b   : > { %s2641_s16 = scalar_select %p48_p5, %s2390_s11, %s50_s24  }
  0x6c   : > { %s2647_s26 = scalar_lea.hbm %s3260_s0, %s1678_s25  ;;  %s371_s9 = sshll.u32 %s361_s3, 4  ;;  %s2649_s9 = int_to_ptr.vmem [resolvable:$true] %s371_s9 }
  0x6d   : > { %p2653_p7 = pnand %p2053_p11, %p2626_p6  ;;  %s2657_s24 = scalar_lea.sflag [#allocation3], %s357_s20 }
  0x6e   : > { %s2226_s27 = scalar_lea.hbm %s2647_s26, 2048  ;;  %s2231_s30 = scalar_lea.hbm %s3260_s0, 4096 }
  0x6f   : > { %p2227_p9 = scmp.ne.s32.totalorder %s2647_s26, %s2226_s27  ;;  %p2228_p12 = pneg %p2653_p7 }
  0x70   : > { %p2232_p4 = scmp.lt.u32.totalorder %s2647_s26, %s3260_s0  ;;  %p2233_p2 = scmp.lt.u32.totalorder %s2231_s30, %s2226_s27 }
  0x71   : > { %p2229_p0 = pnand %p2228_p12, %p2227_p9  ;;  %p2235_p13 = scmp.lt.u32.totalorder %s2226_s27, %s2647_s26 }
  0x72   : > { %p2234_p8 = por %p2233_p2, %p2232_p4 }
  0x73   : > { %p2230_p1 = pneg %p2229_p0 }
  0x74   : > { %p2236_p6 = por %p2235_p13, %p2234_p8 }
  0x76   : > { %p2237_p10 = pnand %p2236_p6, %p2230_p1 }
  0x78   : > { %2240 = shalt.err (!%p2237_p10)
}
  0x79   : > { %s2241_s20 = scalar_lea.vmem %s2649_s9, 2048  ;;  %s2411_s15 = smov [#allocation2]  }
  0x7a   : > { %p2242_p11 = scmp.ne.s32.totalorder %s2649_s9, %s2241_s20  ;;  %s2246_s25 = sshll.u32 %s2411_s15, 4  ;;  %s2247_s25 = int_to_ptr.vmem [resolvable:$false] %s2246_s25 }
  0x7b   : > { %s2248_s23 = scalar_lea.vmem %s2247_s25, 4096  ;;  %p2249_p0 = scmp.lt.s32.totalorder %s2649_s9, %s2247_s25 }
  0x7c   : > { %p2244_p5 = pnand %p2242_p11, %p2228_p12  ;;  %p2250_p4 = scmp.lt.s32.totalorder %s2248_s23, %s2241_s20 }
  0x7e   : > { %p2245_p9 = pneg %p2244_p5  ;;  %p2251_p2 = por %p2250_p4, %p2249_p0 }
  0x80   : > { %p2252_p8 = pnand %p2251_p2, %p2245_p9 }
  0x82   : > { %2255 = shalt.err (!%p2252_p8)
}
  0x83   : > { %2045 = dma.hbm_to_vmem [thread:$0]  (!%p2653_p7), %s2647_s26, 2048, %s2649_s9, %s2657_s24, %s2408_s7, %s2408_s7, %s2409_s4  }
  0x84   : > { %p3297_p12 = scmp.ne.s32.totalorder %s3289_s21, 0 }
  0x85   : > { %s2691_s27 = sand.u32 (!%p3297_p12), 1, %s2386_s10   ;;  %p3298_p1 = scmp.ne.s32.totalorder (!%p3297_p12), %s3286_s19, 0 }
  0x86   : > { %383 = sbr.rel (%p3297_p12) target bundleno = 783 (0x30f), region = 48  ;;  %s1565_s30 = sshll.u32 (!%p3297_p12), %s2691_s27, 7 }
  0x87   : > { %s386_s3 = scalar_lea.sflag (!%p3297_p12), [#allocation3], %s2691_s27  ;;  %s2695_s20 = scalar_lea.vmem (!%p3297_p12), [#allocation2], %s1565_s30 }
  0x8d   : > { %2361 = dma.done.wait (%p3298_p1), %s386_s3, 2048  }
  0x8e   : > { %2363 = vsyncadd (%p3298_p1), %s386_s3, 4294965248  ;;  %p3299_p7 = scmp.ne.s32.totalorder %s3284_s17, 0 }
  0x90   : > { %2365 = dma.done.wait (%p3299_p7), [#allocation6], 1280  }
  0x91   : > { %2367 = vsyncadd (%p3299_p7), [#allocation6], 4294966016 }
  0x92   : > { %2369 = dma.done.wait (%p3299_p7), [#allocation9], 256  }
  0x93   : > { %2371 = vsyncadd (%p3299_p7), [#allocation9], 4294967040  ;;  %s1569_s21 = sshll.u32 %s2691_s27, 6  ;;  %p1570_p13 = scmp.ne.s32.totalorder %s2394_s12, 0 }
  0x94   : > { %s2710_s7 = scalar_lea.vmem [#allocation10], %s1569_s21  ;;  %v449_v0 = vld [vmem:[#allocation7] sm:$0xff] (!%p1570_p13)  ;;  %v450_v1 = vld [vmem:[#allocation7 + $0x8] sm:$0xff] (!%p1570_p13)  ;;  %v453_v2 = vld [vmem:[#allocation8] sm:$0xff] (!%p1570_p13) }
  0x95   : > { %448 = sbr.rel (%p1570_p13) target bundleno = 156 (0x9c), region = 68  ;;  %451 = vst [vmem:[#allocation11] sm:$0xff] (!%p1570_p13), %v449_v0  ;;  %452 = vst [vmem:[#allocation11 + $0x8] sm:$0xff] (!%p1570_p13), %v450_v1  ;;  %v454_v3 = vld [vmem:[#allocation8 + $0x8] sm:$0xff] (!%p1570_p13) }
  0x96   : > { %455 = vst [vmem:[#allocation13] sm:$0xff] (!%p1570_p13), %v453_v2  ;;  %456 = vst [vmem:[#allocation13 + $0x8] sm:$0xff] (!%p1570_p13), %v454_v3 }
  0x9c PF: > { %v2126_v4 = vld [vmem:[%s3261_s1] sm:$0xff]   ;;  %v2127_v5 = vld [vmem:[%s3261_s1 + $0x8] sm:$0xff]   ;;  %v2412_v6 = vmov 0.0   ;;  %v2128_v7 = vld [vmem:[%s3261_s1 + $0x10] sm:$0xff]   ;;  %vm2413_vm0 = vmmov 0   ;;  %s2415_s9 = smov [#allocation11]  }
  0x9d   : > { %1848 = vmatprep.subr.bf16.mxu1 %v2412_v6  ;;  %1816 = vmatprep.subr.bf16.mxu0 %v2126_v4  ;;  %v2129_v8 = vld [vmem:[%s3261_s1 + $0x18] sm:$0xff]   ;;  %v457_v9 = vld [vmem:[%s2695_s20] sm:$0xff]  ;;  %v458_v10 = vld [vmem:[%s2695_s20 + $0x8] sm:$0xff]  ;;  %v2414_v2 = vmov 1.0|1.0   ;;  %s1392_s29 = sshll.u32 %s2415_s9, 4  ;;  %s1393_s29 = int_to_ptr.vmem [resolvable:$true] %s1392_s29 }
  0x9e   : > { %1817 = vmatpush3.bf16.msra.mxu0 %v2126_v4  ;;  %v473_v11 = vpack.c.bf16 %v458_v10, %v457_v9  ;;  %v2130_v12 = vld [vmem:[%s3261_s1 + $0x20] sm:$0xff]   ;;  %v2131_v14 = vld [vmem:[%s3261_s1 + $0x28] sm:$0xff]   ;;  %v2132_v16 = vld [vmem:[%s3261_s1 + $0x30] sm:$0xff]   ;;  %1864 = vmatprep.mubr.msk.bf16.mxu1 %vm2413_vm0, %v2412_v6  ;;  %s2256_s24 = scalar_lea.vmem %s1393_s29, 256  ;;  %p3300_p10 = scmp.ne.s32.totalorder %s3285_s18, 0 }
  0x9f   : > { %1818 = vmatprep.subr.bf16.mxu0 %v2127_v5  ;;  %v2731_v13 = vld [vmem:[#allocation5] sm:$0xff]   ;;  %v2737_v15 = vld [vmem:[#allocation5 + $0x8] sm:$0xff]   ;;  %v2744_v17 = vld [vmem:[#allocation5 + $0x10] sm:$0xff]   ;;  %p2257_p6 = scmp.ne.s32.totalorder %s1393_s29, %s2256_s24  ;;  %p2263_p9 = scmp.lt.s32.totalorder %s1393_s29, %s1393_s29 }
  0xa0   : > { %1832 = vmatprep.mubr.bf16.mxu0 %v473_v11  ;;  %1849 = vmatpush3.bf16.msra.mxu1 %v2731_v13  ;;  %v2133_v18 = vld [vmem:[%s3261_s1 + $0x38] sm:$0xff]   ;;  %v459_v20 = vld [vmem:[%s2695_s20 + $0x10] sm:$0xff]  ;;  %v461_v22 = vld [vmem:[%s2695_s20 + $0x20] sm:$0xff]  ;;  %p2264_p0 = scmp.lt.s32.totalorder %s2256_s24, %s2256_s24 }
  0xa1   : > { %1850 = vmatprep.subr.bf16.mxu1 %v2412_v6  ;;  %v2751_v19 = vld [vmem:[#allocation5 + $0x18] sm:$0xff]   ;;  %v462_v23 = vld [vmem:[%s2695_s20 + $0x28] sm:$0xff]  ;;  %v2759_v24 = vld [vmem:[#allocation5 + $0x20] sm:$0xff]   ;;  %p2258_p11 = pnand %p2257_p6, %p3300_p10 }
  0xa2   : > { %1819 = vmatpush3.bf16.msra.mxu0 %v2127_v5  ;;  %v460_v21 = vld [vmem:[%s2695_s20 + $0x18] sm:$0xff]  ;;  %v475_v26 = vpack.c.bf16 %v462_v23, %v461_v22  ;;  %v2764_v27 = vld [vmem:[#allocation5 + $0x28] sm:$0xff]   ;;  %v463_v28 = vld [vmem:[%s2695_s20 + $0x30] sm:$0xff]  ;;  %p2265_p4 = por %p2264_p0, %p2263_p9 }
  0xa3   : > { %1820 = vmatprep.subr.bf16.mxu0 %v2128_v7  ;;  %v474_v25 = vpack.c.bf16 %v460_v21, %v459_v20  ;;  %v464_v29 = vld [vmem:[%s2695_s20 + $0x38] sm:$0xff]  ;;  %v465_v30 = vld [vmem:[%s2695_s20 + $0x40] sm:$0xff]  ;;  %v466_v31 = vld [vmem:[%s2695_s20 + $0x48] sm:$0xff]  ;;  %p2259_p5 = pneg %p2258_p11 }
  0xa4   : > { %1851 = vmatpush3.bf16.msra.mxu1 %v2737_v15  ;;  %v476_v32 = vpack.c.bf16 %v464_v29, %v463_v28  ;;  %v477_v33 = vpack.c.bf16 %v466_v31, %v465_v30  ;;  %v467_v34 = vld [vmem:[%s2695_s20 + $0x50] sm:$0xff]  ;;  %v468_v35 = vld [vmem:[%s2695_s20 + $0x58] sm:$0xff]  ;;  %v469_v36 = vld [vmem:[%s2695_s20 + $0x60] sm:$0xff] }
  0xa5   : > { %1852 = vmatprep.subr.bf16.mxu1 %v2412_v6  ;;  %v470_v37 = vld [vmem:[%s2695_s20 + $0x68] sm:$0xff]  ;;  %v478_v38 = vpack.c.bf16 %v468_v35, %v467_v34  ;;  %v471_v40 = vld [vmem:[%s2695_s20 + $0x70] sm:$0xff]  ;;  %v472_v41 = vld [vmem:[%s2695_s20 + $0x78] sm:$0xff]  ;;  %p2266_p2 = pnand %p2265_p4, %p2259_p5 }
  0xa6   : > { %1821 = vmatpush3.bf16.msra.mxu0 %v2128_v7  ;;  %v479_v39 = vpack.c.bf16 %v470_v37, %v469_v36  ;;  %v480_v42 = vpack.c.bf16 %v472_v41, %v471_v40  ;;  %v2791_v43 = vld [vmem:[#allocation5 + $0x30] sm:$0xff]   ;;  %v2797_v44 = vld [vmem:[#allocation5 + $0x38] sm:$0xff]   ;;  %v666_v45 = vld [vmem:[#allocation11] sm:$0xff] }
  0xa7   : > { %1822 = vmatprep.subr.bf16.mxu0 %v2129_v8  ;;  %v2810_v46 = vld [vmem:[%s3262_s2] ss:$0 sm:$0xff]  ;;  %v667_v47 = vld [vmem:[#allocation11 + $0x8] sm:$0xff]  ;;  %v670_v49 = vmul.f32 0.9, %v666_v45 }
  0xa8   : > { %1853 = vmatpush3.bf16.msra.mxu1 %v2744_v17  ;;  %v671_v53 = vmul.f32 0.9, %v667_v47 }
  0xa9   : > { %1854 = vmatprep.subr.bf16.mxu1 %v2412_v6 }
  0xaa   : > { %1823 = vmatpush3.bf16.msra.mxu0 %v2129_v8 }
  0xab   : > { %1824 = vmatprep.subr.bf16.mxu0 %v2130_v12 }
  0xac   : > { %1855 = vmatpush3.bf16.msra.mxu1 %v2751_v19 }
  0xad   : > { %1856 = vmatprep.subr.bf16.mxu1 %v2412_v6 }
  0xae   : > { %1825 = vmatpush3.bf16.msra.mxu0 %v2130_v12 }
  0xaf   : > { %1826 = vmatprep.subr.bf16.mxu0 %v2131_v14 }
  0xb0   : > { %1857 = vmatpush3.bf16.msra.mxu1 %v2759_v24 }
  0xb1   : > { %1858 = vmatprep.subr.bf16.mxu1 %v2412_v6 }
  0xb2   : > { %1827 = vmatpush3.bf16.msra.mxu0 %v2131_v14 }
  0xb3   : > { %1828 = vmatprep.subr.bf16.mxu0 %v2132_v16 }
  0xb4   : > { %1859 = vmatpush3.bf16.msra.mxu1 %v2764_v27 }
  0xb5   : > { %1860 = vmatprep.subr.bf16.mxu1 %v2412_v6 }
  0xb6   : > { %1829 = vmatpush3.bf16.msra.mxu0 %v2132_v16 }
  0xb7   : > { %1830 = vmatprep.subr.bf16.mxu0 %v2133_v18 }
  0xb8   : > { %1861 = vmatpush3.bf16.msra.mxu1 %v2791_v43 }
  0xb9   : > { %1862 = vmatprep.subr.bf16.mxu1 %v2412_v6 }
  0xba   : > { %1831 = vmatpush3.bf16.msra.mxu0 %v2133_v18 }
  0xbb   : > { %1868 = vmatprep.subr.bf16.mxu0 %v2412_v6 }
  0xbc   : > { %1863 = vmatpush3.bf16.msra.mxu1 %v2797_v44 }
  0xbd   : > { %1833 = vmatmul.mubr.bf16.vlgmr.msra.gmra.mrb[0].mxu0 %v474_v25  ;;  %1888 = vmatprep.subr.bf16.mxu1 %v2412_v6 }
  0xbe   : > { %1836 = vmatprep.mubr.bf16.mxu0 %v475_v26  ;;  %1869 = vmatpush3.bf16.msra.mxu0 %v2731_v13 }
  0xbf   : > { %1870 = vmatprep.subr.bf16.mxu0 %v2412_v6 }
  0xc2   : > { %1871 = vmatpush3.bf16.msra.mxu0 %v2737_v15 }
  0xc3   : > { %1872 = vmatprep.subr.bf16.mxu0 %v2412_v6 }
  0xc5   : > { %1837 = vmatmul.mubr.bf16.gmra.mrb[4].mxu0 %v476_v32 }
  0xc6   : > { %1840 = vmatprep.mubr.bf16.mxu0 %v477_v33  ;;  %1873 = vmatpush3.bf16.msra.mxu0 %v2744_v17 }
  0xc7   : > { %1874 = vmatprep.subr.bf16.mxu0 %v2412_v6 }
  0xca   : > { %1875 = vmatpush3.bf16.msra.mxu0 %v2751_v19 }
  0xcb   : > { %1876 = vmatprep.subr.bf16.mxu0 %v2412_v6 }
  0xcd   : > { %1841 = vmatmul.mubr.bf16.gmra.mrb[8].mxu0 %v478_v38 }
  0xce   : > { %1844 = vmatprep.mubr.bf16.mxu0 %v479_v39  ;;  %1877 = vmatpush3.bf16.msra.mxu0 %v2759_v24 }
  0xcf   : > { %1878 = vmatprep.subr.bf16.mxu0 %v2412_v6 }
  0xd2   : > { %1879 = vmatpush3.bf16.msra.mxu0 %v2764_v27 }
  0xd3   : > { %1880 = vmatprep.subr.bf16.mxu0 %v2412_v6 }
  0xd5   : > { %1845 = vmatmul.mubr.bf16.gmra.mrb[12].mxu0 %v480_v42 }
  0xd6   : > { %1881 = vmatpush3.bf16.msra.mxu0 %v2791_v43  ;;  %1884 = vmatprep.mubr.msk.bf16.mxu0 %vm2413_vm0, %v2412_v6 }
  0xd7   : > { %1882 = vmatprep.subr.bf16.mxu0 %v2412_v6 }
  0xda   : > { %1883 = vmatpush3.bf16.msra.mxu0 %v2797_v44 }
  0xdb   : > { %1908 = vmatprep.subr.bf16.mxu0 %v2412_v6 }
 0x190   : > { %v1834_v48 = vpop.f32.mrb[0].mxu0 }
 0x191   : > { %v586_v50 = vpop.f32.mrb[1].mxu0  ;;  %v2823_v63 = vadd.f32 %v1834_v48, %v2810_v46 }
 0x192   : > { %v2813_v51 = vadd.f32 %v2810_v46, %v586_v50  ;;  %v1835_v52 = vpop.f32.mrb[2].mxu0 }
 0x193   : > { %v589_v54 = vpop.f32.mrb[3].mxu0  ;;  %v2830_v5 = vadd.f32 %v1835_v52, %v2810_v46 }
 0x194   : > { %v672_v55 = vadd.f32 %v670_v49, %v2813_v51  ;;  %v2817_v56 = vadd.f32 %v2810_v46, %v589_v54 }
 0x196   : > { %vm674_vm1 = vcmp.gt.f32.partialorder %v672_v55, 1.0  ;;  %v673_v57 = vadd.f32 %v671_v53, %v2817_v56 }
 0x197   : > { %v1580_v58 = vsel %vm674_vm1, 1.0, %v2412_v6 }
 0x198   : > { %v680_v59 = vsub.f32 %v672_v55, %v1580_v58  ;;  %vm675_vm2 = vcmp.gt.f32.partialorder %v673_v57, 1.0  ;;  %v1838_v60 = vpop.f32.mrb[4].mxu0 }
 0x199   : > { %v1581_v61 = vsel %vm675_vm2, 1.0, %v2412_v6  ;;  %vm1591_vm3 = vmpackc.low %vm675_vm2, %vm674_vm1  ;;  %v602_v62 = vpop.f32.mrb[5].mxu0  ;;  %v2863_v31 = vadd.f32 %v1838_v60, %v2810_v46 }
 0x19a   : > { %v802_v0 = vmul.f32 0.9, %v680_v59  ;;  %v681_v1 = vsub.f32 %v673_v57, %v1581_v61  ;;  %1865 = vmatmul.mubr.msk.bf16.vlgmr.msra.gmra.mrb[0].mxu1 %vm1591_vm3, %v2414_v2  ;;  %v1839_v3 = vpop.f32.mrb[6].mxu0  ;;  %v2838_v11 = vadd.f32 %v2810_v46, %v602_v62 }
 0x19b   : > { %1889 = vmatpush3.bf16.msra.mxu1 %v2731_v13  ;;  %v605_v4 = vpop.f32.mrb[7].mxu0  ;;  %1904 = vmatprep.mubr.msk.bf16.mxu1 %vm2413_vm0, %v2412_v6  ;;  %v2872_v37 = vadd.f32 %v1839_v3, %v2810_v46 }
 0x19c   : > { %v803_v7 = vmul.f32 0.9, %v681_v1  ;;  %1890 = vmatprep.subr.bf16.mxu1 %v2412_v6  ;;  %v804_v8 = vadd.f32 %v802_v0, %v2823_v63  ;;  %v2846_v21 = vadd.f32 %v2810_v46, %v605_v4 }
 0x19e   : > { %v805_v9 = vadd.f32 %v803_v7, %v2830_v5  ;;  %vm806_vm4 = vcmp.gt.f32.partialorder %v804_v8, 1.0 }
 0x19f   : > { %1891 = vmatpush3.bf16.msra.mxu1 %v2737_v15  ;;  %v1597_v10 = vsel %vm806_vm4, 1.0, %v2412_v6 }
 0x1a0   : > { %vm807_vm5 = vcmp.gt.f32.partialorder %v805_v9, 1.0  ;;  %v812_v12 = vsub.f32 %v804_v8, %v1597_v10  ;;  %1892 = vmatprep.subr.bf16.mxu1 %v2412_v6  ;;  %v2841_v14 = vpop.f32.mrb[8].mxu0 }
 0x1a1   : > { %vm1599_vm6 = vmpackc.low %vm807_vm5, %vm806_vm4  ;;  %v1598_v16 = vsel %vm807_vm5, 1.0, %v2412_v6  ;;  %v618_v18 = vpop.f32.mrb[9].mxu0  ;;  %v2914_v60 = vadd.f32 %v2841_v14, %v2810_v46 }
 0x1a2   : > { %v881_v20 = vmul.f32 0.9, %v812_v12  ;;  %1885 = vmatmul.mubr.msk.bf16.vlgmr.msra.gmra.mrb[16].mxu0 %vm1599_vm6, %v2414_v2  ;;  %v813_v22 = vsub.f32 %v805_v9, %v1598_v16  ;;  %v2848_v23 = vpop.f32.mrb[10].mxu0  ;;  %v2887_v48 = vadd.f32 %v2810_v46, %v618_v18 }
 0x1a3   : > { %1893 = vmatpush3.bf16.msra.mxu1 %v2744_v17  ;;  %1909 = vmatpush3.bf16.msra.mxu0 %v2731_v13  ;;  %v621_v25 = vpop.f32.mrb[11].mxu0  ;;  %v2927_v1 = vadd.f32 %v2848_v23, %v2810_v46 }
 0x1a4   : > { %v883_v26 = vadd.f32 %v881_v20, %v2838_v11  ;;  %v882_v28 = vmul.f32 0.9, %v813_v22  ;;  %1894 = vmatprep.subr.bf16.mxu1 %v2412_v6  ;;  %1910 = vmatprep.subr.bf16.mxu0 %v2412_v6  ;;  %v2894_v53 = vadd.f32 %v2810_v46, %v621_v25 }
 0x1a5   : > { %1924 = vmatprep.mubr.msk.bf16.mxu0 %vm2413_vm0, %v2412_v6 }
 0x1a6   : > { %vm885_vm7 = vcmp.gt.f32.partialorder %v883_v26, 1.0  ;;  %v884_v29 = vadd.f32 %v882_v28, %v2846_v21 }
 0x1a7   : > { %v1607_v30 = vsel %vm885_vm7, 1.0, %v2412_v6  ;;  %1895 = vmatpush3.bf16.msra.mxu1 %v2751_v19  ;;  %1911 = vmatpush3.bf16.msra.mxu0 %v2737_v15 }
 0x1a8   : > { %v891_v32 = vsub.f32 %v883_v26, %v1607_v30  ;;  %vm886_vm8 = vcmp.gt.f32.partialorder %v884_v29, 1.0  ;;  %1896 = vmatprep.subr.bf16.mxu1 %v2412_v6  ;;  %1912 = vmatprep.subr.bf16.mxu0 %v2412_v6  ;;  %v2867_v33 = vpop.f32.mrb[12].mxu0 }
 0x1a9   : > { %v1608_v34 = vsel %vm886_vm8, 1.0, %v2412_v6  ;;  %v634_v35 = vpop.f32.mrb[13].mxu0  ;;  %vm1609_vm13 = vmpackc.low %vm886_vm8, %vm885_vm7  ;;  %v2986_v28 = vadd.f32 %v2867_v33, %v2810_v46 }
 0x1aa   : > { %v960_v36 = vmul.f32 0.9, %v891_v32  ;;  %v892_v38 = vsub.f32 %v884_v29, %v1608_v34  ;;  %v2874_v39 = vpop.f32.mrb[14].mxu0  ;;  %v2950_v10 = vadd.f32 %v2810_v46, %v634_v35 }
 0x1ab   : > { %1897 = vmatpush3.bf16.msra.mxu1 %v2759_v24  ;;  %1913 = vmatpush3.bf16.msra.mxu0 %v2744_v17  ;;  %v637_v40 = vpop.f32.mrb[15].mxu0  ;;  %v2997_v34 = vadd.f32 %v2874_v39, %v2810_v46 }
 0x1ac   : > { %v961_v41 = vmul.f32 0.9, %v892_v38  ;;  %1898 = vmatprep.subr.bf16.mxu1 %v2412_v6  ;;  %1914 = vmatprep.subr.bf16.mxu0 %v2412_v6  ;;  %v962_v42 = vadd.f32 %v960_v36, %v2863_v31  ;;  %v2963_v18 = vadd.f32 %v2810_v46, %v637_v40 }
 0x1ae   : > { %vm964_vm9 = vcmp.gt.f32.partialorder %v962_v42, 1.0  ;;  %v963_v45 = vadd.f32 %v961_v41, %v2872_v37 }
 0x1af   : > { %1899 = vmatpush3.bf16.msra.mxu1 %v2764_v27  ;;  %1915 = vmatpush3.bf16.msra.mxu0 %v2751_v19  ;;  %v1617_v47 = vsel %vm964_vm9, 1.0, %v2412_v6 }
 0x1b0   : > { %v970_v49 = vsub.f32 %v962_v42, %v1617_v47  ;;  %1900 = vmatprep.subr.bf16.mxu1 %v2412_v6  ;;  %1916 = vmatprep.subr.bf16.mxu0 %v2412_v6  ;;  %vm965_vm10 = vcmp.gt.f32.partialorder %v963_v45, 1.0 }
 0x1b1   : > { %v1618_v50 = vsel %vm965_vm10, 1.0, %v2412_v6  ;;  %vm1619_vm1 = vmpackc.low %vm965_vm10, %vm964_vm9 }
 0x1b2   : > { %v1039_v52 = vmul.f32 0.9, %v970_v49  ;;  %v971_v54 = vsub.f32 %v963_v45, %v1618_v50 }
 0x1b3   : > { %1901 = vmatpush3.bf16.msra.mxu1 %v2791_v43  ;;  %1917 = vmatpush3.bf16.msra.mxu0 %v2759_v24 }
 0x1b4   : > { %v2899_v55 = vadd.f32 %v1039_v52, %v2887_v48  ;;  %v1040_v57 = vmul.f32 0.9, %v971_v54  ;;  %1902 = vmatprep.subr.bf16.mxu1 %v2412_v6  ;;  %1918 = vmatprep.subr.bf16.mxu0 %v2412_v6 }
 0x1b6   : > { %vm1043_vm11 = vcmp.gt.f32.partialorder %v2899_v55, 1.0  ;;  %v2905_v58 = vadd.f32 %v1040_v57, %v2894_v53 }
 0x1b7   : > { %v1627_v59 = vsel %vm1043_vm11, 1.0, %v2412_v6  ;;  %1903 = vmatpush3.bf16.msra.mxu1 %v2797_v44  ;;  %1919 = vmatpush3.bf16.msra.mxu0 %v2764_v27 }
 0x1b8   : > { %v1049_v61 = vsub.f32 %v2899_v55, %v1627_v59  ;;  %vm1044_vm12 = vcmp.gt.f32.partialorder %v2905_v58, 1.0  ;;  %1920 = vmatprep.subr.bf16.mxu0 %v2412_v6  ;;  %1928 = vmatprep.subr.bf16.mxu1 %v2412_v6 }
 0x1b9   : > { %v1628_v62 = vsel %vm1044_vm12, 1.0, %v2412_v6  ;;  %vm1629_vm6 = vmpackc.low %vm1044_vm12, %vm1043_vm11 }
 0x1ba   : > { %v1118_v0 = vmul.f32 0.9, %v1049_v61  ;;  %v1050_v3 = vsub.f32 %v2905_v58, %v1628_v62  ;;  %1905 = vmatmul.mubr.msk.bf16.vlgmr.msra.gmra.mrb[4].mxu1 %vm1609_vm13, %v2414_v2 }
 0x1bb   : > { %1921 = vmatpush3.bf16.msra.mxu0 %v2791_v43  ;;  %1929 = vmatpush3.bf16.msra.mxu1 %v2731_v13 }
 0x1bc   : > { %v1119_v4 = vmul.f32 0.9, %v1050_v3  ;;  %1922 = vmatprep.subr.bf16.mxu0 %v2412_v6  ;;  %1930 = vmatprep.subr.bf16.mxu1 %v2412_v6  ;;  %v2936_v7 = vadd.f32 %v1118_v0, %v2914_v60 }
 0x1bd   : > { %1944 = vmatprep.mubr.msk.bf16.mxu1 %vm2413_vm0, %v2412_v6 }
 0x1be   : > { %vm1122_vm14 = vcmp.gt.f32.partialorder %v2936_v7, 1.0  ;;  %v2942_v8 = vadd.f32 %v1119_v4, %v2927_v1 }
 0x1bf   : > { %1923 = vmatpush3.bf16.msra.mxu0 %v2797_v44  ;;  %1931 = vmatpush3.bf16.msra.mxu1 %v2737_v15  ;;  %v1637_v9 = vsel %vm1122_vm14, 1.0, %v2412_v6 }
 0x1c0   : > { %v1128_v12 = vsub.f32 %v2936_v7, %v1637_v9  ;;  %1932 = vmatprep.subr.bf16.mxu1 %v2412_v6  ;;  %1948 = vmatprep.subr.bf16.mxu0 %v2412_v6  ;;  %vm1123_vm15 = vcmp.gt.f32.partialorder %v2942_v8, 1.0 }
 0x1c1   : > { %v1638_v14 = vsel %vm1123_vm15, 1.0, %v2412_v6  ;;  %vm1639_vm7 = vmpackc.low %vm1123_vm15, %vm1122_vm14 }
 0x1c2   : > { %v1197_v16 = vmul.f32 0.9, %v1128_v12  ;;  %1925 = vmatmul.mubr.msk.bf16.vlgmr.msra.gmra.mrb[20].mxu0 %vm1619_vm1, %v2414_v2  ;;  %v1129_v20 = vsub.f32 %v2942_v8, %v1638_v14 }
 0x1c3   : > { %1933 = vmatpush3.bf16.msra.mxu1 %v2744_v17  ;;  %1949 = vmatpush3.bf16.msra.mxu0 %v2731_v13 }
 0x1c4   : > { %v2969_v22 = vadd.f32 %v1197_v16, %v2950_v10  ;;  %v1198_v23 = vmul.f32 0.9, %v1129_v20  ;;  %1934 = vmatprep.subr.bf16.mxu1 %v2412_v6  ;;  %1950 = vmatprep.subr.bf16.mxu0 %v2412_v6 }
 0x1c5   : > { %1964 = vmatprep.mubr.msk.bf16.mxu0 %vm2413_vm0, %v2412_v6 }
 0x1c6   : > { %vm1201_vm2 = vcmp.gt.f32.partialorder %v2969_v22, 1.0  ;;  %v2977_v25 = vadd.f32 %v1198_v23, %v2963_v18 }
 0x1c7   : > { %v1647_v26 = vsel %vm1201_vm2, 1.0, %v2412_v6  ;;  %1935 = vmatpush3.bf16.msra.mxu1 %v2751_v19  ;;  %1951 = vmatpush3.bf16.msra.mxu0 %v2737_v15 }
 0x1c8   : > { %v1207_v29 = vsub.f32 %v2969_v22, %v1647_v26  ;;  %vm1202_vm3 = vcmp.gt.f32.partialorder %v2977_v25, 1.0  ;;  %1936 = vmatprep.subr.bf16.mxu1 %v2412_v6  ;;  %1952 = vmatprep.subr.bf16.mxu0 %v2412_v6 }
 0x1c9   : > { %v1648_v30 = vsel %vm1202_vm3, 1.0, %v2412_v6 }
 0x1ca   : > { %v1276_v32 = vmul.f32 0.9, %v1207_v29  ;;  %v1208_v33 = vsub.f32 %v2977_v25, %v1648_v30 }
 0x1cb   : > { %1937 = vmatpush3.bf16.msra.mxu1 %v2759_v24  ;;  %1953 = vmatpush3.bf16.msra.mxu0 %v2744_v17 }
 0x1cc   : > { %v3003_v35 = vadd.f32 %v1276_v32, %v2986_v28  ;;  %v1277_v36 = vmul.f32 0.9, %v1208_v33  ;;  %1938 = vmatprep.subr.bf16.mxu1 %v2412_v6  ;;  %1954 = vmatprep.subr.bf16.mxu0 %v2412_v6 }
 0x1ce   : > { %v3008_v38 = vadd.f32 %v1277_v36, %v2997_v34  ;;  %vm1280_vm4 = vcmp.gt.f32.partialorder %v3003_v35, 1.0 }
 0x1cf   : > { %1939 = vmatpush3.bf16.msra.mxu1 %v2764_v27  ;;  %1955 = vmatpush3.bf16.msra.mxu0 %v2751_v19  ;;  %v1657_v46 = vsel %vm1280_vm4, 1.0, %v2412_v6 }
 0x1d0   : > { %1940 = vmatprep.subr.bf16.mxu1 %v2412_v6  ;;  %1956 = vmatprep.subr.bf16.mxu0 %v2412_v6  ;;  %vm1281_vm5 = vcmp.gt.f32.partialorder %v3008_v38, 1.0  ;;  %v1286_v39 = vsub.f32 %v3003_v35, %v1657_v46 }
 0x1d1   : > { %v1658_v40 = vsel %vm1281_vm5, 1.0, %v2412_v6  ;;  %vm1659_vm8 = vmpackc.low %vm1281_vm5, %vm1280_vm4 }
 0x1d2   : > { %v1287_v41 = vsub.f32 %v3008_v38, %v1658_v40  ;;  %1355 = vst [vmem:[#allocation11] sm:$0xff] %v1286_v39 }
 0x1d3   : > { %1941 = vmatpush3.bf16.msra.mxu1 %v2791_v43  ;;  %1957 = vmatpush3.bf16.msra.mxu0 %v2759_v24 }
 0x1d4   : > { %1942 = vmatprep.subr.bf16.mxu1 %v2412_v6  ;;  %1958 = vmatprep.subr.bf16.mxu0 %v2412_v6  ;;  %1356 = vst [vmem:[#allocation11 + $0x8] sm:$0xff] %v1287_v41 }
 0x1d7   : > { %1943 = vmatpush3.bf16.msra.mxu1 %v2797_v44  ;;  %1959 = vmatpush3.bf16.msra.mxu0 %v2764_v27 }
 0x1d8   : > { %1960 = vmatprep.subr.bf16.mxu0 %v2412_v6  ;;  %1968 = vmatprep.subr.bf16.mxu1 %v2412_v6 }
 0x1da   : > { %1945 = vmatmul.mubr.msk.bf16.vlgmr.msra.gmra.mrb[8].mxu1 %vm1629_vm6, %v2414_v2 }
 0x1db   : > { %1961 = vmatpush3.bf16.msra.mxu0 %v2791_v43  ;;  %1969 = vmatpush3.bf16.msra.mxu1 %v2731_v13 }
 0x1dc   : > { %1962 = vmatprep.subr.bf16.mxu0 %v2412_v6  ;;  %1970 = vmatprep.subr.bf16.mxu1 %v2412_v6 }
 0x1dd   : > { %1984 = vmatprep.mubr.msk.bf16.mxu1 %vm2413_vm0, %v2412_v6 }
 0x1df   : > { %1963 = vmatpush3.bf16.msra.mxu0 %v2797_v44  ;;  %1971 = vmatpush3.bf16.msra.mxu1 %v2737_v15 }
 0x1e0   : > { %1972 = vmatprep.subr.bf16.mxu1 %v2412_v6  ;;  %1988 = vmatprep.subr.bf16.mxu0 %v2412_v6 }
 0x1e2   : > { %1965 = vmatmul.mubr.msk.bf16.vlgmr.msra.gmra.mrb[24].mxu0 %vm1639_vm7, %v2414_v2 }
 0x1e3   : > { %1973 = vmatpush3.bf16.msra.mxu1 %v2744_v17  ;;  %1989 = vmatpush3.bf16.msra.mxu0 %v2731_v13 }
 0x1e4   : > { %1974 = vmatprep.subr.bf16.mxu1 %v2412_v6  ;;  %1990 = vmatprep.subr.bf16.mxu0 %v2412_v6 }
 0x1e5   : > { %2004 = vmatprep.mubr.msk.bf16.mxu0 %vm2413_vm0, %v2412_v6  ;;  %vm1649_vm0 = vmpackc.low %vm1202_vm3, %vm1201_vm2 }
 0x1e7   : > { %1975 = vmatpush3.bf16.msra.mxu1 %v2751_v19  ;;  %1991 = vmatpush3.bf16.msra.mxu0 %v2737_v15 }
 0x1e8   : > { %1976 = vmatprep.subr.bf16.mxu1 %v2412_v6  ;;  %1992 = vmatprep.subr.bf16.mxu0 %v2412_v6 }
 0x1eb   : > { %1977 = vmatpush3.bf16.msra.mxu1 %v2759_v24  ;;  %1993 = vmatpush3.bf16.msra.mxu0 %v2744_v17 }
 0x1ec   : > { %1978 = vmatprep.subr.bf16.mxu1 %v2412_v6  ;;  %1994 = vmatprep.subr.bf16.mxu0 %v2412_v6 }
 0x1ef   : > { %1979 = vmatpush3.bf16.msra.mxu1 %v2764_v27  ;;  %1995 = vmatpush3.bf16.msra.mxu0 %v2751_v19 }
 0x1f0   : > { %1980 = vmatprep.subr.bf16.mxu1 %v2412_v6  ;;  %1996 = vmatprep.subr.bf16.mxu0 %v2412_v6 }
 0x1f3   : > { %1981 = vmatpush3.bf16.msra.mxu1 %v2791_v43  ;;  %1997 = vmatpush3.bf16.msra.mxu0 %v2759_v24 }
 0x1f4   : > { %1982 = vmatprep.subr.bf16.mxu1 %v2412_v6  ;;  %1998 = vmatprep.subr.bf16.mxu0 %v2412_v6 }
 0x1f7   : > { %1983 = vmatpush3.bf16.msra.mxu1 %v2797_v44  ;;  %1999 = vmatpush3.bf16.msra.mxu0 %v2764_v27 }
 0x1f8   : > { %2000 = vmatprep.subr.bf16.mxu0 %v2412_v6 }
 0x1fa   : > { %1985 = vmatmul.mubr.msk.bf16.vlgmr.msra.gmra.mrb[12].mxu1 %vm1649_vm0, %v2414_v2 }
 0x1fb   : > { %2001 = vmatpush3.bf16.msra.mxu0 %v2791_v43 }
 0x1fc   : > { %2002 = vmatprep.subr.bf16.mxu0 %v2412_v6 }
 0x1ff   : > { %2003 = vmatpush3.bf16.msra.mxu0 %v2797_v44 }
 0x202   : > { %2005 = vmatmul.mubr.msk.bf16.vlgmr.msra.gmra.mrb[28].mxu0 %vm1659_vm8, %v2414_v2 }
 0x203   : > { %2269 = shalt.err (!%p2266_p2)
}
 0x204   : > { %s2270_s23 = scalar_lea.hbm %s3268_s8, 256 }
 0x205   : > { %p2271_p8 = scmp.ne.s32.totalorder %s3268_s8, %s2270_s23  ;;  %p2276_p7 = scmp.lt.u32.totalorder %s2270_s23, %s3268_s8 }
 0x207   : > { %p2272_p12 = pnand %p2271_p8, %p3300_p10 }
 0x209   : > { %p2273_p1 = pneg %p2272_p12 }
 0x20b   : > { %p2278_p13 = pnand %p2276_p7, %p2273_p1 }
 0x20d   : > { %2281 = shalt.err (!%p2278_p13)
}
 0x20e   : > { %s2416_s4 = smov 128   ;;  %s2417_s17 = smov 8   ;;  %v668_v15 = vld [vmem:[#allocation13] sm:$0xff]  ;;  %v669_v19 = vld [vmem:[#allocation13 + $0x8] sm:$0xff] }
 0x20f   : > { %2024 = dma.vmem_to_hbm [thread:$0]  (%p3300_p10), %s1393_s29, 256, %s3268_s8, [#allocation12], %s2416_s4, %s2416_s4, %s2417_s17   ;;  %v778_v27 = vmul.f32 0.9, %v668_v15  ;;  %v779_v45 = vmul.f32 0.9, %v669_v19 }
 0x210   : > { %s3301_s15 = sld [smem:[#allocation22_spill]]  ;;  %s1696_s29 = sshll.u32 %s2394_s12, 10 }
 0x211   : > { %s1376_s25 = sshll.u32 %s2710_s7, 4  ;;  %s2418_s23 = smov [#allocation13]   ;;  %s3178_s25 = int_to_ptr.vmem [resolvable:$true] %s1376_s25 }
 0x212   : > { %s1408_s30 = sshll.u32 %s2418_s23, 4  ;;  %s3302_s19 = sld [smem:[#allocation23_spill]]  ;;  %s3180_s30 = int_to_ptr.vmem [resolvable:$true] %s1408_s30 }
 0x213   : > { %s1360_s12 = scalar_lea.sflag [#allocation4], %s2691_s27  ;;  %s2282_s26 = scalar_lea.vmem %s3178_s25, 1024 }
 0x214   : > { %p2283_p6 = scmp.ne.s32.totalorder %s3178_s25, %s2282_s26  ;;  %s2419_s9 = smov [#allocation10]  }
 0x215   : > { %s2286_s24 = sshll.u32 %s2419_s9, 4  ;;  %s2287_s24 = int_to_ptr.vmem [resolvable:$false] %s2286_s24 }
 0x216   : > { %v3114_v13 = vld [vmem:[%s3301_s15] ss:$0 sm:$0xff]  ;;  %p2284_p11 = pnand %p2283_p6, %p2632_p3  ;;  %s2288_s15 = scalar_lea.vmem %s2287_s24, 2048 }
 0x217   : > { %p2289_p9 = scmp.lt.s32.totalorder %s3178_s25, %s2287_s24  ;;  %p2290_p0 = scmp.lt.s32.totalorder %s2288_s15, %s2282_s26 }
 0x218   : > { %s3176_s20 = scalar_lea.hbm %s3302_s19, %s1696_s29  ;;  %p2285_p5 = pneg %p2284_p11 }
 0x219   : > { %p2291_p4 = por %p2290_p0, %p2289_p9 }
 0x21b   : > { %p2292_p2 = pnand %p2291_p4, %p2285_p5 }
 0x26d   : > { %v771_v17 = vpop.f32.mrb[0].mxu1 }
 0x26e   : > { %v772_v24 = vadd.f32 %v3114_v13, %v771_v17  ;;  %v1866_v43 = vpop.f32.mrb[1].mxu1 }
 0x26f   : > { %v774_v44 = vpop.f32.mrb[2].mxu1 }
 0x270   : > { %v780_v2 = vadd.f32 %v772_v24, %v2813_v51  ;;  %v775_v42 = vadd.f32 %v3114_v13, %v774_v44  ;;  %v1867_v47 = vpop.f32.mrb[3].mxu1 }
 0x272   : > { %v782_v49 = vadd.f32 %v780_v2, %v778_v27  ;;  %v781_v50 = vadd.f32 %v775_v42, %v2817_v56 }
 0x274   : > { %vm784_vm9 = vcmp.gt.f32.partialorder %v782_v49, 1.0  ;;  %v783_v52 = vadd.f32 %v781_v50, %v779_v45 }
 0x275   : > { %v1593_v54 = vsel %vm784_vm9, 1.0, %v2412_v6  ;;  %v849_v55 = vpop.f32.mrb[16].mxu0 }
 0x276   : > { %v790_v57 = vsub.f32 %v782_v49, %v1593_v54  ;;  %vm785_vm10 = vcmp.gt.f32.partialorder %v783_v52, 1.0  ;;  %v850_v58 = vadd.f32 %v3114_v13, %v849_v55  ;;  %v1886_v59 = vpop.f32.mrb[17].mxu0 }
 0x277   : > { %v1594_v51 = vsel %vm785_vm10, 1.0, %v2412_v6  ;;  %v852_v61 = vpop.f32.mrb[18].mxu0 }
 0x278   : > { %v791_v62 = vsub.f32 %v783_v52, %v1594_v51  ;;  %v1698_v0 = vpack.c.bf16 %v1594_v51, %v1593_v54  ;;  %v856_v3 = vmul.f32 0.9, %v790_v57  ;;  %v858_v56 = vadd.f32 %v850_v58, %v2823_v63  ;;  %v1887_v4 = vpop.f32.mrb[19].mxu0 }
 0x279   : > { %v853_v7 = vadd.f32 %v3114_v13, %v852_v61 }
 0x27a   : > { %1699 = vst [vmem:[%s2710_s7] sm:$0xff] %v1698_v0   ;;  %v860_v8 = vadd.f32 %v858_v56, %v856_v3  ;;  %v857_v9 = vmul.f32 0.9, %v791_v62 }
 0x27b   : > { %v859_v12 = vadd.f32 %v853_v7, %v2830_v5 }
 0x27c   : > { %vm862_vm11 = vcmp.gt.f32.partialorder %v860_v8, 1.0 }
 0x27d   : > { %v861_v14 = vadd.f32 %v859_v12, %v857_v9  ;;  %v1601_v16 = vsel %vm862_vm11, 1.0, %v2412_v6 }
 0x27e   : > { %v868_v23 = vsub.f32 %v860_v8, %v1601_v16 }
 0x27f   : > { %vm863_vm12 = vcmp.gt.f32.partialorder %v861_v14, 1.0 }
 0x280   : > { %v1602_v20 = vsel %vm863_vm12, 1.0, %v2412_v6  ;;  %v935_v32 = vmul.f32 0.9, %v868_v23 }
 0x281   : > { %v1701_v22 = vpack.c.bf16 %v1602_v20, %v1601_v16  ;;  %v869_v63 = vsub.f32 %v861_v14, %v1602_v20 }
 0x283   : > { %1721 = vst [vmem:[%s2710_s7 + $0x8] sm:$0xff] %v1701_v22   ;;  %v936_v38 = vmul.f32 0.9, %v869_v63 }
 0x28d   : > { %v928_v25 = vpop.f32.mrb[4].mxu1 }
 0x28e   : > { %v929_v26 = vadd.f32 %v3114_v13, %v928_v25  ;;  %v1906_v29 = vpop.f32.mrb[5].mxu1 }
 0x28f   : > { %v931_v30 = vpop.f32.mrb[6].mxu1 }
 0x290   : > { %v937_v33 = vadd.f32 %v929_v26, %v2838_v11  ;;  %v932_v5 = vadd.f32 %v3114_v13, %v931_v30  ;;  %v1907_v35 = vpop.f32.mrb[7].mxu1 }
 0x292   : > { %v939_v36 = vadd.f32 %v937_v33, %v935_v32  ;;  %v938_v46 = vadd.f32 %v932_v5, %v2846_v21 }
 0x294   : > { %vm941_vm13 = vcmp.gt.f32.partialorder %v939_v36, 1.0  ;;  %v940_v39 = vadd.f32 %v938_v46, %v936_v38 }
 0x295   : > { %v1611_v40 = vsel %vm941_vm13, 1.0, %v2412_v6  ;;  %v1007_v41 = vpop.f32.mrb[20].mxu0 }
 0x296   : > { %v947_v15 = vsub.f32 %v939_v36, %v1611_v40  ;;  %vm942_vm14 = vcmp.gt.f32.partialorder %v940_v39, 1.0  ;;  %v1008_v17 = vadd.f32 %v3114_v13, %v1007_v41  ;;  %v1926_v19 = vpop.f32.mrb[21].mxu0 }
 0x297   : > { %v1612_v11 = vsel %vm942_vm14, 1.0, %v2412_v6  ;;  %v1010_v24 = vpop.f32.mrb[22].mxu0 }
 0x298   : > { %v948_v27 = vsub.f32 %v940_v39, %v1612_v11  ;;  %v1704_v43 = vpack.c.bf16 %v1612_v11, %v1611_v40  ;;  %v1014_v44 = vmul.f32 0.9, %v947_v15  ;;  %v1016_v21 = vadd.f32 %v1008_v17, %v2863_v31  ;;  %v1927_v2 = vpop.f32.mrb[23].mxu0 }
 0x299   : > { %v1011_v42 = vadd.f32 %v3114_v13, %v1010_v24 }
 0x29a   : > { %1722 = vst [vmem:[%s2710_s7 + $0x10] sm:$0xff] %v1704_v43   ;;  %v1018_v45 = vadd.f32 %v1016_v21, %v1014_v44  ;;  %v1015_v47 = vmul.f32 0.9, %v948_v27 }
 0x29b   : > { %v1017_v49 = vadd.f32 %v1011_v42, %v2872_v37 }
 0x29c   : > { %vm1020_vm15 = vcmp.gt.f32.partialorder %v1018_v45, 1.0 }
 0x29d   : > { %v1019_v50 = vadd.f32 %v1017_v49, %v1015_v47  ;;  %v1621_v52 = vsel %vm1020_vm15, 1.0, %v2412_v6 }
 0x29e   : > { %v1026_v57 = vsub.f32 %v1018_v45, %v1621_v52 }
 0x29f   : > { %vm1021_vm1 = vcmp.gt.f32.partialorder %v1019_v50, 1.0 }
 0x2a0   : > { %v1622_v54 = vsel %vm1021_vm1, 1.0, %v2412_v6  ;;  %v1093_v62 = vmul.f32 0.9, %v1026_v57 }
 0x2a1   : > { %v1707_v55 = vpack.c.bf16 %v1622_v54, %v1621_v52  ;;  %v1027_v31 = vsub.f32 %v1019_v50, %v1622_v54 }
 0x2a3   : > { %1723 = vst [vmem:[%s2710_s7 + $0x18] sm:$0xff] %v1707_v55   ;;  %v1094_v4 = vmul.f32 0.9, %v1027_v31 }
 0x2ad   : > { %v1086_v58 = vpop.f32.mrb[8].mxu1 }
 0x2ae   : > { %v1087_v59 = vadd.f32 %v3114_v13, %v1086_v58  ;;  %v1946_v51 = vpop.f32.mrb[9].mxu1 }
 0x2af   : > { %v1089_v61 = vpop.f32.mrb[10].mxu1 }
 0x2b0   : > { %v1095_v0 = vadd.f32 %v1087_v59, %v2887_v48  ;;  %v1090_v37 = vadd.f32 %v3114_v13, %v1089_v61  ;;  %v1947_v3 = vpop.f32.mrb[11].mxu1 }
 0x2b2   : > { %v1097_v56 = vadd.f32 %v1095_v0, %v1093_v62  ;;  %v1096_v7 = vadd.f32 %v1090_v37, %v2894_v53 }
 0x2b4   : > { %vm1099_vm2 = vcmp.gt.f32.partialorder %v1097_v56, 1.0  ;;  %v1098_v8 = vadd.f32 %v1096_v7, %v1094_v4 }
 0x2b5   : > { %v1631_v9 = vsel %vm1099_vm2, 1.0, %v2412_v6  ;;  %v1165_v12 = vpop.f32.mrb[24].mxu0 }
 0x2b6   : > { %v1105_v14 = vsub.f32 %v1097_v56, %v1631_v9  ;;  %vm1100_vm3 = vcmp.gt.f32.partialorder %v1098_v8, 1.0  ;;  %v1166_v16 = vadd.f32 %v3114_v13, %v1165_v12  ;;  %v1966_v20 = vpop.f32.mrb[25].mxu0 }
 0x2b7   : > { %v1632_v48 = vsel %vm1100_vm3, 1.0, %v2412_v6  ;;  %v1168_v22 = vpop.f32.mrb[26].mxu0 }
 0x2b8   : > { %v1106_v23 = vsub.f32 %v1098_v8, %v1632_v48  ;;  %v1710_v25 = vpack.c.bf16 %v1632_v48, %v1631_v9  ;;  %v1172_v63 = vmul.f32 0.9, %v1105_v14  ;;  %v1174_v53 = vadd.f32 %v1166_v16, %v2914_v60  ;;  %v1967_v26 = vpop.f32.mrb[27].mxu0 }
 0x2b9   : > { %v1169_v29 = vadd.f32 %v3114_v13, %v1168_v22 }
 0x2ba   : > { %1724 = vst [vmem:[%s2710_s7 + $0x20] sm:$0xff] %v1710_v25   ;;  %v1176_v30 = vadd.f32 %v1174_v53, %v1172_v63  ;;  %v1173_v32 = vmul.f32 0.9, %v1106_v23 }
 0x2bb   : > { %v1175_v33 = vadd.f32 %v1169_v29, %v2927_v1 }
 0x2bc   : > { %vm1178_vm4 = vcmp.gt.f32.partialorder %v1176_v30, 1.0 }
 0x2bd   : > { %v1177_v5 = vadd.f32 %v1175_v33, %v1173_v32  ;;  %v1641_v35 = vsel %vm1178_vm4, 1.0, %v2412_v6 }
 0x2be   : > { %v1184_v46 = vsub.f32 %v1176_v30, %v1641_v35 }
 0x2bf   : > { %vm1179_vm5 = vcmp.gt.f32.partialorder %v1177_v5, 1.0 }
 0x2c0   : > { %v1642_v36 = vsel %vm1179_vm5, 1.0, %v2412_v6  ;;  %v1251_v17 = vmul.f32 0.9, %v1184_v46 }
 0x2c1   : > { %v1713_v38 = vpack.c.bf16 %v1642_v36, %v1641_v35  ;;  %v1185_v60 = vsub.f32 %v1177_v5, %v1642_v36 }
 0x2c3   : > { %1725 = vst [vmem:[%s2710_s7 + $0x28] sm:$0xff] %v1713_v38   ;;  %v1252_v27 = vmul.f32 0.9, %v1185_v60 }
 0x2cd   : > { %v1244_v39 = vpop.f32.mrb[12].mxu1 }
 0x2ce   : > { %v1245_v40 = vadd.f32 %v3114_v13, %v1244_v39  ;;  %v1986_v41 = vpop.f32.mrb[13].mxu1 }
 0x2cf   : > { %v1247_v15 = vpop.f32.mrb[14].mxu1 }
 0x2d0   : > { %v1253_v19 = vadd.f32 %v1245_v40, %v2950_v10  ;;  %v1248_v1 = vadd.f32 %v3114_v13, %v1247_v15  ;;  %v1987_v11 = vpop.f32.mrb[15].mxu1 }
 0x2d2   : > { %v1255_v24 = vadd.f32 %v1253_v19, %v1251_v17  ;;  %v1254_v43 = vadd.f32 %v1248_v1, %v2963_v18 }
 0x2d4   : > { %vm1257_vm6 = vcmp.gt.f32.partialorder %v1255_v24, 1.0  ;;  %v1256_v44 = vadd.f32 %v1254_v43, %v1252_v27 }
 0x2d5   : > { %v1651_v21 = vsel %vm1257_vm6, 1.0, %v2412_v6  ;;  %v1323_v2 = vpop.f32.mrb[28].mxu0 }
 0x2d6   : > { %v1263_v42 = vsub.f32 %v1255_v24, %v1651_v21  ;;  %vm1258_vm7 = vcmp.gt.f32.partialorder %v1256_v44, 1.0  ;;  %v1324_v45 = vadd.f32 %v3114_v13, %v1323_v2  ;;  %v2006_v47 = vpop.f32.mrb[29].mxu0 }
 0x2d7   : > { %v1652_v10 = vsel %vm1258_vm7, 1.0, %v2412_v6  ;;  %v1326_v49 = vpop.f32.mrb[30].mxu0 }
 0x2d8   : > { %v1264_v50 = vsub.f32 %v1256_v44, %v1652_v10  ;;  %v1716_v52 = vpack.c.bf16 %v1652_v10, %v1651_v21  ;;  %v1330_v54 = vmul.f32 0.9, %v1263_v42  ;;  %v1332_v18 = vadd.f32 %v1324_v45, %v2986_v28  ;;  %v2007_v55 = vpop.f32.mrb[31].mxu0 }
 0x2d9   : > { %v1327_v57 = vadd.f32 %v3114_v13, %v1326_v49 }
 0x2da   : > { %1726 = vst [vmem:[%s2710_s7 + $0x30] sm:$0xff] %v1716_v52   ;;  %v1334_v58 = vadd.f32 %v1332_v18, %v1330_v54  ;;  %v1331_v31 = vmul.f32 0.9, %v1264_v50 }
 0x2db   : > { %v1333_v59 = vadd.f32 %v1327_v57, %v2997_v34 }
 0x2dc   : > { %vm1336_vm0 = vcmp.gt.f32.partialorder %v1334_v58, 1.0 }
 0x2dd   : > { %v1661_v51 = vsel %vm1336_vm0, 1.0, %v2412_v6  ;;  %v1335_v61 = vadd.f32 %v1333_v59, %v1331_v31 }
 0x2de   : > { %v1342_v62 = vsub.f32 %v1334_v58, %v1661_v51 }
 0x2df   : > { %vm1337_vm8 = vcmp.gt.f32.partialorder %v1335_v61, 1.0 }
 0x2e0   : > { %1357 = vst [vmem:[#allocation13] sm:$0xff] %v1342_v62  ;;  %v1662_v28 = vsel %vm1337_vm8, 1.0, %v2412_v6 }
 0x2e1   : > { %v1343_v34 = vsub.f32 %v1335_v61, %v1662_v28  ;;  %v1719_v13 = vpack.c.bf16 %v1662_v28, %v1661_v51 }
 0x2e3   : > { %1727 = vst [vmem:[%s2710_s7 + $0x38] sm:$0xff] %v1719_v13   ;;  %1358 = vst [vmem:[#allocation13 + $0x8] sm:$0xff] %v1343_v34 }
 0x2e4   : > { %2295 = shalt.err (!%p2292_p2)
}
 0x2e5   : > { %s2296_s7 = scalar_lea.hbm %s3176_s20, 1024  ;;  %s2300_s3 = scalar_lea.hbm %s3302_s19, 2048 }
 0x2e6   : > { %p2297_p8 = scmp.ne.s32.totalorder %s3176_s20, %s2296_s7  ;;  %p2301_p7 = scmp.lt.u32.totalorder %s3176_s20, %s3302_s19 }
 0x2e7   : > { %p2302_p13 = scmp.lt.u32.totalorder %s2300_s3, %s2296_s7  ;;  %p2304_p11 = scmp.lt.u32.totalorder %s2296_s7, %s3176_s20 }
 0x2e8   : > { %p2298_p12 = pnand %p2297_p8, %p2632_p3 }
 0x2e9   : > { %p2303_p6 = por %p2302_p13, %p2301_p7 }
 0x2ea   : > { %p2299_p1 = pneg %p2298_p12 }
 0x2eb   : > { %p2305_p5 = por %p2304_p11, %p2303_p6 }
 0x2ed   : > { %p2306_p9 = pnand %p2305_p5, %p2299_p1 }
 0x2ef   : > { %2309 = shalt.err (!%p2306_p9)
}
 0x2f0   : > { %s2420_s26 = smov 64   ;;  %s2421_s24 = smov 4  }
 0x2f1   : > { %2022 = dma.vmem_to_hbm [thread:$0]  (%p2632_p3), %s3178_s25, 1024, %s3176_s20, %s1360_s12, %s2420_s26, %s2420_s26, %s2421_s24  }
 0x2f2   : > { %s2310_s15 = scalar_lea.vmem %s3180_s30, 256  ;;  %p2317_p8 = scmp.lt.s32.totalorder %s3180_s30, %s3180_s30 }
 0x2f3   : > { %p2311_p0 = scmp.ne.s32.totalorder %s3180_s30, %s2310_s15  ;;  %p2318_p12 = scmp.lt.s32.totalorder %s2310_s15, %s2310_s15 }
 0x2f5   : > { %p2312_p4 = pnand %p2311_p0, %p3300_p10  ;;  %p2319_p1 = por %p2318_p12, %p2317_p8 }
 0x2f7   : > { %p2313_p2 = pneg %p2312_p4 }
 0x2f9   : > { %p2320_p7 = pnand %p2319_p1, %p2313_p2 }
 0x2fb   : > { %2323 = shalt.err (!%p2320_p7)
}
 0x2fc   : > { %s3303_s23 = sld [smem:[#allocation24_spill]] }
 0x302   : > { %s2324_s3 = scalar_lea.hbm %s3303_s23, 256 }
 0x303   : > { %p2325_p3 = scmp.ne.s32.totalorder %s3303_s23, %s2324_s3  ;;  %p2330_p11 = scmp.lt.u32.totalorder %s2324_s3, %s3303_s23 }
 0x305   : > { %p2326_p13 = pnand %p2325_p3, %p3300_p10 }
 0x307   : > { %p2327_p6 = pneg %p2326_p13 }
 0x309   : > { %p2332_p5 = pnand %p2330_p11, %p2327_p6 }
 0x30b   : > { %2335 = shalt.err (!%p2332_p5)
}
 0x30c   : > { %2026 = dma.vmem_to_hbm [thread:$0]  (%p3300_p10), %s3180_s30, 256, %s3303_s23, [#allocation12], %s2416_s4, %s2416_s4, %s2417_s17  }
 0x30d   : > { %2373 = dma.done.wait (%p3300_p10), [#allocation12], 512  }
 0x30e   : > { %2375 = vsyncadd (%p3300_p10), [#allocation12], 4294966784 }
 0x30f PF: > { %s3304_s9 = sld [smem:[#allocation19_spill]]  ;;  %s3305_s26 = sld [smem:[#allocation20_spill]] }
 0x310   : > { %p3307_p0 = scmp.ge.s32.totalorder %s2402_s14, 2 }
 0x315   : > { %s1431_s24 = sand.u32 1, %s3304_s9   ;;  %p3306_p9 = scmp.ne.s32.totalorder %s3305_s26, 0 }
 0x316   : > { %s1432_s15 = scalar_lea.sflag [#allocation4], %s1431_s24 }
 0x317   : > { %p2047_p4 = pnand %p3307_p0, %p3306_p9 }
 0x319   : > { %2377 = dma.done.wait (!%p2047_p4), %s1432_s15, 1024  }
 0x31a   : > { %2379 = vsyncadd (!%p2047_p4), %s1432_s15, 4294966272  ;;  %s29_s14 = sadd.s32 1, %s2402_s14   ;;  %s3308_s30 = smov %s2386_s10 }
 0x31b   : > { %p26_p2 = scmp.ge.s32.totalorder %s29_s14, 4   ;;  %s3309_s10 = smov %s2390_s11 }
 0x31c   : > { %s3310_s11 = smov %s2641_s16  ;;  %s3311_s12 = smov %s2398_s13 }
 0x31d   : > { %s3312_s13 = smov %s3314_s22  ;;  %28 = sbr.rel (!%p26_p2) target bundleno = 14 (0xe), region = 136 }
 0x324   :  { %1437 = vsyncpa [#allocation3], 1 }
 0x325   :  { %1439 = vsyncpa [#allocation3 + $0x1], 1 }
 0x326   :  { %1440 = vsyncpa [#allocation6], 1 }
 0x327   :  { %1441 = vsyncpa [#allocation9], 1 }
 0x328   :  { %1442 = vsyncpa [#allocation4], 1 }
 0x329   :  { %1444 = vsyncpa [#allocation4 + $0x1], 1 }
 0x32a   :  { %1445 = vsyncpa [#allocation12], 1 }

</bundles_post_ra>
